<compile_context>
chip_gen: v5e
topology: v5e:2x2
jax: 0.10.0
libtpu: 0.0.40
codegen_flags: <defaults>
</compile_context>

<pallas_src>
import functools
import math

import jax
import jax.numpy as jnp
from jax.experimental import pallas as pl
from jax.experimental.pallas import tpu as pltpu


def _round_up(x: int, m: int) -> int:
    return ((x + m - 1) // m) * m


def _fourier_kernel(*refs, include_input: bool, D: int, C: int):
    if include_input:
        x_ref, xT_ref, bT_ref, o_ref = refs   # (tile,D), (D,tile), (C,D), (tile,out_dim)
    else:
        xT_ref, bT_ref, o_ref = refs

    xT = xT_ref[...].astype(jnp.float32)      # (D, tile)  points on lanes
    bT = bT_ref[...].astype(jnp.float32)      # (C, D)     already scaled by 2*pi

    # Tiny contraction (K = D): unrolled VPU multiply-add instead of an MXU
    # matmul.  (C,1) * (1,tile) broadcasts -> (C, tile).
    xp = bT[:, 0:1] * xT[0:1, :]
    for d in range(1, D):
        xp = xp + bT[:, d:d + 1] * xT[d:d + 1, :]

    s = jnp.sin(xp)                           # (C, tile)  lane-dense
    c = jnp.cos(xp)                           # (C, tile)

    # Points-major stores.  The (C, tile) -> (tile, C) transposes run on the
    # XLU and overlap with the sin/cos polynomial (different VLIW slots);
    # stores are lane-masked (out_dim < 128) but the output hits HBM once.
    base = 0
    if include_input:
        o_ref[:, :D] = x_ref[...].astype(o_ref.dtype)
        base = D
    o_ref[:, base:base + C] = s.T.astype(o_ref.dtype)
    o_ref[:, base + C:base + 2 * C] = c.T.astype(o_ref.dtype)


def fourier_feature(x, B, *, include_input=True, tile_n=8192, out_dtype=None):
    """x: [..., D], B: [D, C] -> [..., 2*C + (D if include_input else 0)].

    Pass out_dtype=jnp.bfloat16 to halve output store bytes when the consumer
    tolerates it.
    """
    *lead, D = x.shape
    D2, C = B.shape
    assert D == D2, (D, D2)
    out_dim = 2 * C + (D if include_input else 0)
    out_dtype = x.dtype if out_dtype is None else out_dtype

    x2 = x.reshape(-1, D)
    N = x2.shape[0]
    if N == 0:
        return jnp.zeros((*lead, out_dim), dtype=out_dtype)

    # Point-axis tile (the lane axis inside the kernel): multiple of 128,
    # capped for VMEM (v7x: 64 MiB physical / 32 MiB scoped default), and for
    # mid-size N split into >=2 grid steps so both v7x TensorCores are used
    # (harmless no-op on single-TC v5e/v6e).
    tile = max(128, _round_up(min(int(tile_n), 16384), 128))
    n128 = _round_up(N, 128)
    if n128 <= tile:
        tile = _round_up((n128 + 1) // 2, 128) if n128 >= 2048 else n128
    grid = pl.cdiv(N, tile)

    # Layout plumbing (tiny vs the out_dim x N output): points-on-lanes copy
    # of x for the compute, and B pre-scaled by 2*pi + pre-transposed.
    xT = x2.T                                          # (D, N)
    bT = (2.0 * math.pi) * B.T.astype(jnp.float32)     # (C, D)

    kernel = functools.partial(
        _fourier_kernel, include_input=include_input, D=D, C=C)

    in_specs = []
    args = []
    if include_input:
        # Points-major x for the direct passthrough copy (no in-kernel
        # transpose of a 3-row block needed).
        in_specs.append(pl.BlockSpec((tile, D), lambda i: (i, 0)))
        args.append(x2)
    in_specs += [
        pl.BlockSpec((D, tile), lambda i: (0, i)),     # x, points on lanes
        pl.BlockSpec((C, D), lambda i: (0, 0)),        # B resident every step
    ]
    args += [xT, bT]

    # Generous (but v7x-safe) scoped VMEM for large tiles: double-buffered
    # (tile, out_dim) output + (tile, D) input + lane-dense temporaries.
    vmem_limit = 48 * 1024 * 1024 if tile >= 4096 else None

    out = pl.pallas_call(
        kernel,
        out_shape=jax.ShapeDtypeStruct((N, out_dim), out_dtype),
        grid_spec=pltpu.PrefetchScalarGridSpec(
            num_scalar_prefetch=0,
            grid=(grid,),
            in_specs=in_specs,
            # Points-major output: written once, no wrapper transpose.
            out_specs=pl.BlockSpec((tile, out_dim), lambda i: (i, 0)),
        ),
        compiler_params=pltpu.CompilerParams(
            dimension_semantics=("parallel",),
            vmem_limit_bytes=vmem_limit,
        ),
    )(*args)

    return out.reshape(*lead, out_dim)


if __name__ == "__main__":
    # Module config: channels=32, sigma=1.0, input_dims=3, include_input=True
    channels = 32
    sigma = 1.0
    input_dims = 3
    include_input = True

    key = jax.random.PRNGKey(0)
    kx, kb = jax.random.split(key)

    # Deterministic "buffer" init mirroring torch.randn(input_dims, channels) * sigma
    B = jax.random.normal(kb, (input_dims, channels), dtype=jnp.float32) * sigma

    # Small input: 256 points with 3 coordinates each.
    N = 256
    x = jax.random.normal(kx, (N, input_dims), dtype=jnp.float32)

    out = fourier_feature(x, B, include_input=include_input)
    out = jax.block_until_ready(out)

    # Reference in plain JAX.
    xp_ref = (2.0 * math.pi * x) @ B
    ref = jnp.concatenate([x, jnp.sin(xp_ref), jnp.cos(xp_ref)], axis=-1)
    assert out.shape == (N, 2 * channels + input_dims), out.shape
    err = float(jnp.max(jnp.abs(out - ref)))
    assert jnp.allclose(out, ref, atol=1e-4, rtol=1e-4), err

    print("KERNEL_OK")
</pallas_src>

<mosaic_0001>
module attributes {stable_mosaic.version = 11 : i64} {
  func.func @_fourier_kernel(%arg0: i32, %arg1: memref<256x3xf32, #tpu.memory_space<vmem>>, %arg2: memref<3x256xf32, #tpu.memory_space<vmem>>, %arg3: memref<32x3xf32, #tpu.memory_space<vmem>>, %arg4: memref<256x67xf32, #tpu.memory_space<vmem>>) attributes {dimension_semantics = [#tpu.dimension_semantics<parallel>], iteration_bounds = array<i64: 1>, scalar_prefetch = 0 : i64, scratch_operands = 0 : i64, tpu.core_type = #tpu.core_type<tc>, window_params = [{transform_indices = @transform_0, window_bounds = array<i64: 256, 3>}, {transform_indices = @transform_1, window_bounds = array<i64: 3, 256>}, {pipeline_mode = #tpu.pipeline_mode<synchronous>, transform_indices = @transform_2, window_bounds = array<i64: 32, 3>}, {transform_indices = @transform_3, window_bounds = array<i64: 256, 67>}]} {
    %c0 = arith.constant 0 : index
    %c0_0 = arith.constant 0 : index
    %0 = vector.load %arg2[%c0, %c0_0] : memref<3x256xf32, #tpu.memory_space<vmem>>, vector<3x256xf32>
    %c0_1 = arith.constant 0 : index
    %c0_2 = arith.constant 0 : index
    %1 = vector.load %arg3[%c0_1, %c0_2] : memref<32x3xf32, #tpu.memory_space<vmem>>, vector<32x3xf32>
    %2 = vector.extract_strided_slice %1 {offsets = [0, 0], sizes = [32, 1], strides = [1, 1]} : vector<32x3xf32> to vector<32x1xf32>
    %3 = vector.extract_strided_slice %0 {offsets = [0, 0], sizes = [1, 256], strides = [1, 1]} : vector<3x256xf32> to vector<1x256xf32>
    %4 = vector.broadcast %2 : vector<32x1xf32> to vector<32x256xf32>
    %5 = vector.broadcast %3 : vector<1x256xf32> to vector<32x256xf32>
    %6 = arith.mulf %4, %5 : vector<32x256xf32>
    %7 = vector.extract_strided_slice %1 {offsets = [0, 1], sizes = [32, 1], strides = [1, 1]} : vector<32x3xf32> to vector<32x1xf32>
    %8 = vector.extract_strided_slice %0 {offsets = [1, 0], sizes = [1, 256], strides = [1, 1]} : vector<3x256xf32> to vector<1x256xf32>
    %9 = vector.broadcast %7 : vector<32x1xf32> to vector<32x256xf32>
    %10 = vector.broadcast %8 : vector<1x256xf32> to vector<32x256xf32>
    %11 = arith.mulf %9, %10 : vector<32x256xf32>
    %12 = arith.addf %6, %11 : vector<32x256xf32>
    %13 = vector.extract_strided_slice %1 {offsets = [0, 2], sizes = [32, 1], strides = [1, 1]} : vector<32x3xf32> to vector<32x1xf32>
    %14 = vector.extract_strided_slice %0 {offsets = [2, 0], sizes = [1, 256], strides = [1, 1]} : vector<3x256xf32> to vector<1x256xf32>
    %15 = vector.broadcast %13 : vector<32x1xf32> to vector<32x256xf32>
    %16 = vector.broadcast %14 : vector<1x256xf32> to vector<32x256xf32>
    %17 = arith.mulf %15, %16 : vector<32x256xf32>
    %18 = arith.addf %12, %17 : vector<32x256xf32>
    %19 = math.sin %18 : vector<32x256xf32>
    %20 = math.cos %18 : vector<32x256xf32>
    %c0_3 = arith.constant 0 : index
    %c0_4 = arith.constant 0 : index
    %21 = vector.load %arg1[%c0_3, %c0_4] : memref<256x3xf32, #tpu.memory_space<vmem>>, vector<256x3xf32>
    %c0_5 = arith.constant 0 : index
    %c0_6 = arith.constant 0 : index
    %22 = vector.load %arg4[%c0_5, %c0_6] : memref<256x67xf32, #tpu.memory_space<vmem>>, vector<256x3xf32>
    tpu.vector_store %arg4[%c0_5, %c0_6], %21 {strides = array<i32>} : memref<256x67xf32, #tpu.memory_space<vmem>>, vector<256x3xf32>,
    %23 = tpu.transpose %19, [1, 0] : vector<32x256xf32> -> vector<256x32xf32>
    %c0_7 = arith.constant 0 : index
    %c3 = arith.constant 3 : index
    %24 = vector.load %arg4[%c0_7, %c3] : memref<256x67xf32, #tpu.memory_space<vmem>>, vector<256x32xf32>
    tpu.vector_store %arg4[%c0_7, %c3], %23 {strides = array<i32>} : memref<256x67xf32, #tpu.memory_space<vmem>>, vector<256x32xf32>,
    %25 = tpu.transpose %20, [1, 0] : vector<32x256xf32> -> vector<256x32xf32>
    %c0_8 = arith.constant 0 : index
    %c35 = arith.constant 35 : index
    %26 = vector.load %arg4[%c0_8, %c35] : memref<256x67xf32, #tpu.memory_space<vmem>>, vector<256x32xf32>
    tpu.vector_store %arg4[%c0_8, %c35], %25 {strides = array<i32>} : memref<256x67xf32, #tpu.memory_space<vmem>>, vector<256x32xf32>,
    return
  }
  func.func @transform_0(%arg0: i32) -> (i32, i32) {
    %c0_i32 = arith.constant 0 : i32
    %c0_i32_0 = arith.constant 0 : i32
    return %arg0, %c0_i32 : i32, i32
  }
  func.func @transform_1(%arg0: i32) -> (i32, i32) {
    %c0_i32 = arith.constant 0 : i32
    %c0_i32_0 = arith.constant 0 : i32
    return %c0_i32, %arg0 : i32, i32
  }
  func.func @transform_2(%arg0: i32) -> (i32, i32) {
    %c0_i32 = arith.constant 0 : i32
    %c0_i32_0 = arith.constant 0 : i32
    %c0_i32_1 = arith.constant 0 : i32
    return %c0_i32, %c0_i32_0 : i32, i32
  }
  func.func @transform_3(%arg0: i32) -> (i32, i32) {
    %c0_i32 = arith.constant 0 : i32
    %c0_i32_0 = arith.constant 0 : i32
    return %arg0, %c0_i32 : i32, i32
  }
}

</mosaic_0001>

<bundles_post_ra>
// kernel: tpu_custom_call.1
= control target key start
LH: loop header
LB: loop body
LE: loop exit
PB: predicated region body
PF: predicated region fallthrough
CT: control target
= control target key end

     0   :  { %v5193_v0 = vmov 0   ;;  %v3190_v3 = vmov 1   ;;  %v3191_v6 = vmov 2   ;;  %s5175_s2 = inlined_call_operand.vmem [shape: f32[32,3], index: 2, kind: input, shape index: {}]   ;;  %s5176_s1 = inlined_call_operand.vmem [shape: f32[3,256], index: 1, kind: input, shape index: {}]   ;;  %s5177_s0 = inlined_call_operand.vmem [shape: f32[256,3], index: 0, kind: input, shape index: {}]   ;;  %s5178_s3 = inlined_call_operand.vmem [shape: f32[256,67], index: 3, kind: output, shape index: {}]  }
   0x1   :  { %3182 = vset.pattern.permute.xlu1 %v5193_v0  ;;  %3181 = vset.pattern.permute.xlu0 %v5193_v0  ;;  %v17_v1 = vld [vmem:[%s5175_s2 + $0x10] sm:$0xff]  ;;  %v15_v2 = vld [vmem:[%s5175_s2] sm:$0xff]  ;;  %v18_v4 = vld [vmem:[%s5175_s2 + $0x18] sm:$0xff] }
   0x2   :  { %31 = vperm.xlu1 %3182, %v17_v1   ;;  %21 = vperm.xlu0 %3181, %v15_v2   ;;  %v16_v5 = vld [vmem:[%s5175_s2 + $0x8] sm:$0xff]  ;;  %v14_v8 = vld [vmem:[%s5176_s1] sm:$0x77]  ;;  %s3198_s1 = smov 3   ;;  %s3199_s2 = smov 35  }
   0x3   :  { %3183 = vset.pattern.permute.xlu2 %v3190_v3  ;;  %v71_v10 = vperm.slane %v14_v8, 5  ;;  %v40_v11 = vperm.slane %v14_v8, 0  ;;  %v41_v12 = vperm.slane %v14_v8, 4  ;;  %v109_v13 = vperm.slane %v14_v8, 6 }
   0x4   :  { %55 = vperm.xlu2 %3183, %v15_v2   ;;  %v70_v19 = vperm.slane %v14_v8, 1  ;;  %v108_v29 = vperm.slane %v14_v8, 2 }
   0x5   :  { %v3239_v14 = vperm.slane %v71_v10, 1  ;;  %v44_v15 = vperm.slane %v40_v11, 0  ;;  %v45_v16 = vperm.slane %v41_v12, 0  ;;  %v3241_v17 = vperm.slane %v109_v13, 2 }
   0x6   :  { %v74_v27 = vperm.slane %v70_v19, 1  ;;  %v112_v33 = vperm.slane %v108_v29, 2 }
   0xa   :  { %36 = vperm.xlu1 %3182, %v18_v4   ;;  %26 = vperm.xlu0 %3181, %v16_v5  }
   0xc   :  { %59 = vperm.xlu2 %3183, %v16_v5  }
  0x12   :  { %3185 = vset.pattern.permute.xlu1 %v3190_v3  ;;  %3184 = vset.pattern.permute.xlu0 %v3190_v3 }
  0x13   :  { %67 = vperm.xlu1 %3185, %v18_v4   ;;  %63 = vperm.xlu0 %3184, %v17_v1  }
  0x14   :  { %3186 = vset.pattern.permute.xlu2 %v3191_v6 }
  0x15   :  { %93 = vperm.xlu2 %3186, %v15_v2  }
  0x1b   :  { %3187 = vset.pattern.permute.xlu1 %v3191_v6  ;;  %3188 = vset.pattern.permute.xlu0 %v3191_v6 }
  0x1c   :  { %97 = vperm.xlu1 %3187, %v16_v5   ;;  %105 = vperm.xlu0 %3188, %v18_v4  }
  0x1d   :  { %101 = vperm.xlu2 %3186, %v17_v1  }
  0x5e   :  { %v56_v7 = vpop.permute.xlu2 %55 }
  0x5f   :  { %v77_v20 = vmul.f32 %v3239_v14, %v56_v7  ;;  %v76_v31 = vmul.f32 %v74_v27, %v56_v7 }
  0x66   :  { %v3237_v9 = vpop.permute.xlu2 %59 }
  0x67   :  { %v78_v39 = vmul.f32 %v74_v27, %v3237_v9 }
  0x6f   :  { %v94_v18 = vpop.permute.xlu2 %93 }
  0x70   :  { %v115_v26 = vmul.f32 %v3241_v17, %v94_v18  ;;  %v114_v42 = vmul.f32 %v112_v33, %v94_v18  ;;  %v79_v18 = vmul.f32 %v3239_v14, %v3237_v9 }
  0x74   :  { %v32_v21 = vpop.permute.xlu1 %31  ;;  %v22_v22 = vpop.permute.xlu0 %21 }
  0x75   :  { %v50_v23 = vmul.f32 %v44_v15, %v32_v21  ;;  %v51_v24 = vmul.f32 %v45_v16, %v32_v21  ;;  %v47_v25 = vmul.f32 %v45_v16, %v22_v22  ;;  %v46_v32 = vmul.f32 %v44_v15, %v22_v22 }
  0x77   :  { %v85_v28 = vadd.f32 %v77_v20, %v47_v25  ;;  %v84_v41 = vadd.f32 %v76_v31, %v46_v32  ;;  %v102_v45 = vpop.permute.xlu2 %101 }
  0x78   :  { %v118_v50 = vmul.f32 %v112_v33, %v102_v45  ;;  %v119_v51 = vmul.f32 %v3241_v17, %v102_v45 }
  0x79   :  { %v3245_v30 = vadd.f32 %v115_v26, %v85_v28  ;;  %v3249_v46 = vadd.f32 %v114_v42, %v84_v41 }
  0x7b   :  { %v288_v36 = vand.u32 2139095040, %v3245_v30  ;;  %v133_v56 = vand.u32 2139095040, %v3249_v46  ;;  %v5180_v4 = vand.u32 2147483647, %v3245_v30 }
  0x7c   :  { %v37_v34 = vpop.permute.xlu1 %36  ;;  %v27_v35 = vpop.permute.xlu0 %26 }
  0x7d   :  { %v52_v37 = vmul.f32 %v44_v15, %v37_v34  ;;  %v53_v38 = vmul.f32 %v45_v16, %v37_v34  ;;  %v48_v40 = vmul.f32 %v44_v15, %v27_v35  ;;  %v289_v44 = vshrl.u32 %v288_v36, 23 }
  0x7e   :  { %v134_v1 = vshrl.u32 %v133_v56, 23  ;;  %v49_v5 = vmul.f32 %v45_v16, %v27_v35  ;;  %v292_v9 = vand.u32 8388607, %v5180_v4 }
  0x7f   :  { %v86_v43 = vadd.f32 %v78_v39, %v48_v40  ;;  %v3124_v47 = vadd.s32 4294967169, %v289_v44  ;;  %v5179_v40 = vand.u32 2147483647, %v3249_v46 }
  0x80   :  { %v3121_v11 = vadd.s32 4294967169, %v134_v1  ;;  %v87_v25 = vadd.f32 %v79_v18, %v49_v5  ;;  %v293_v39 = vor.u32 8388608, %v292_v9 }
  0x81   :  { %v295_v61 = vadd.s32 1, %v3124_v47  ;;  %v5191_v47 = vmov 920167782   ;;  %v3322_v56 = vand.u32 8388607, %v5179_v40 }
  0x82   :  { %v140_v28 = vadd.s32 1, %v3121_v11 }
  0x83   :  { %vm296_vm0 = vcmp.gt.s32.totalorder %v295_v61, 0 }
  0x84   :  { %v297_v22 = vsel %vm296_vm0, %v295_v61, 0  ;;  %vm141_vm3 = vcmp.gt.s32.totalorder %v140_v28, 0 }
  0x85   :  { %v68_v48 = vpop.permute.xlu1 %67  ;;  %v64_v49 = vpop.permute.xlu0 %63  ;;  %v3341_v11 = vshrl.u32 %v297_v22, 5 }
  0x86   :  { %v82_v52 = vmul.f32 %v74_v27, %v68_v48  ;;  %v83_v53 = vmul.f32 %v3239_v14, %v68_v48  ;;  %v80_v54 = vmul.f32 %v74_v27, %v64_v49  ;;  %v81_v55 = vmul.f32 %v3239_v14, %v64_v49 }
  0x87   :  { %v3275_v14 = vand.u32 31, %v297_v22  ;;  %v5181_v49 = vmov 1326507024   ;;  %vm320_vm5 = vcmp.lt.s32.totalorder %v3341_v11, 4  ;;  %vm317_vm8 = vcmp.lt.s32.totalorder %v3341_v11, 1 }
  0x88   :  { %v90_v57 = vadd.f32 %v82_v52, %v52_v37  ;;  %v91_v58 = vadd.f32 %v83_v53, %v53_v38  ;;  %v88_v59 = vadd.f32 %v80_v54, %v50_v23  ;;  %v89_v60 = vadd.f32 %v81_v55, %v51_v24 }
  0x89   :  { %v3293_v41 = vsub.s32 32, %v3275_v14  ;;  %v3318_v55 = vshll.u32 %v293_v39, 8  ;;  %vm319_vm9 = vcmp.lt.s32.totalorder %v3341_v11, 3  ;;  %vm318_vm10 = vcmp.lt.s32.totalorder %v3341_v11, 2 }
  0x8a   :  { %v3255_v62 = vadd.f32 %v118_v50, %v88_v59  ;;  %v3257_v63 = vadd.f32 %v119_v51, %v89_v60 }
  0x8b   :  { %v312_v59 = vshrl.u32 %v5191_v47, %v3293_v41  ;;  %v3355_v22 = vand.u32 65535, %v3318_v55 }
  0x8c   :  { %5225 = vst [vmem:[#allocation2_spill] sm:$0xff] %v3255_v62  ;;  %v753_v2 = vand.u32 2139095040, %v3255_v62  ;;  %v908_v3 = vand.u32 2139095040, %v3257_v63 }
  0x8e   :  { %v754_v6 = vshrl.u32 %v753_v2, 23  ;;  %v909_v7 = vshrl.u32 %v908_v3, 23  ;;  %v98_v8 = vpop.permute.xlu1 %97  ;;  %v106_v10 = vpop.permute.xlu0 %105  ;;  %v5187_v2 = vmov 2475754826  }
  0x8f   :  { %v116_v12 = vmul.f32 %v112_v33, %v98_v8  ;;  %v120_v13 = vmul.f32 %v112_v33, %v106_v10  ;;  %v121_v15 = vmul.f32 %v3241_v17, %v106_v10  ;;  %v117_v21 = vmul.f32 %v3241_v17, %v98_v8 }
  0x90   :  { %v3133_v19 = vadd.s32 4294967169, %v754_v6  ;;  %v3136_v20 = vadd.s32 4294967169, %v909_v7  ;;  %v303_v3 = vshrl.u32 %v5187_v2, %v3293_v41  ;;  %v5183_v8 = vmov 2102212464  }
  0x91   :  { %v3266_v23 = vadd.f32 %v116_v12, %v86_v43  ;;  %v3268_v16 = vadd.f32 %v120_v13, %v90_v57  ;;  %v3270_v24 = vadd.f32 %v121_v15, %v91_v58  ;;  %v3277_v17 = vadd.f32 %v117_v21, %v87_v25 }
  0x92   :  { %v760_v26 = vadd.s32 1, %v3133_v19  ;;  %v915_v27 = vadd.s32 1, %v3136_v20  ;;  %v3324_v57 = vsel %vm141_vm3, %v140_v28, 0  ;;  %v311_v10 = vshll.u32 %v5183_v8, %v3275_v14 }
  0x93   :  { %5226 = vst [vmem:[#allocation3_spill] sm:$0xff] %v3268_v16  ;;  %v443_v29 = vand.u32 2139095040, %v3266_v23  ;;  %v1063_v34 = vand.u32 2139095040, %v3268_v16  ;;  %v1218_v37 = vand.u32 2139095040, %v3270_v24  ;;  %v598_v44 = vand.u32 2139095040, %v3277_v17 }
  0x94   :  { %5227 = vst [vmem:[#allocation4_spill] sm:$0xff] %v3270_v24  ;;  %vm761_vm1 = vcmp.gt.s32.totalorder %v760_v26, 0  ;;  %vm916_vm2 = vcmp.gt.s32.totalorder %v915_v27, 0  ;;  %v5189_v12 = vmov 683565275   ;;  %v309_v19 = vshrl.u32 %v5183_v8, %v3293_v41 }
  0x95   :  { %v3279_v31 = vsel %vm761_vm1, %v760_v26, 0  ;;  %v3281_v32 = vsel %vm916_vm2, %v915_v27, 0  ;;  %v444_v33 = vshrl.u32 %v443_v29, 23  ;;  %v1064_v45 = vshrl.u32 %v1063_v34, 23 }
  0x96   :  { %v3285_v35 = vand.u32 31, %v3279_v31  ;;  %v3288_v36 = vand.u32 31, %v3281_v32  ;;  %v1219_v52 = vshrl.u32 %v1218_v37, 23  ;;  %v599_v1 = vshrl.u32 %v598_v44, 23 }
  0x97   :  { %v3127_v38 = vadd.s32 4294967169, %v444_v33  ;;  %v3139_v6 = vadd.s32 4294967169, %v1064_v45  ;;  %v302_v13 = vshll.u32 %v5189_v12, %v3275_v14  ;;  %v5185_v15 = vmov 2131351028  }
  0x98   :  { %5228 = vst [vmem:[#allocation5_spill] sm:$0xff] %v3285_v35  ;;  %v3296_v42 = vsub.s32 32, %v3285_v35  ;;  %v3299_v43 = vsub.s32 32, %v3288_v36  ;;  %v3304_v48 = vshll.u32 %v5191_v47, %v3285_v35  ;;  %v3312_v53 = vshll.u32 %v5191_v47, %v3288_v36 }
  0x99   :  { %v450_v51 = vadd.s32 1, %v3127_v38  ;;  %v3142_v7 = vadd.s32 4294967169, %v1219_v52  ;;  %v306_v18 = vshrl.u32 %v5185_v15, %v3293_v41  ;;  %v305_v21 = vshll.u32 %v5187_v2, %v3275_v14 }
  0x9a   :  { %5229 = vst [vmem:[#allocation6_spill] sm:$0xff] %v3296_v42  ;;  %v3308_v50 = vshrl.u32 %v5181_v49, %v3296_v42  ;;  %v3316_v54 = vshrl.u32 %v5181_v49, %v3299_v43  ;;  %v313_v25 = vor.u32 %v312_v59, %v311_v10  ;;  %v3130_v26 = vadd.s32 4294967169, %v599_v1 }
  0x9b   :  { %5230 = vst [vmem:[#allocation7_spill] sm:$0xff] %v3304_v48  ;;  %vm451_vm4 = vcmp.gt.s32.totalorder %v450_v51, 0  ;;  %v304_v27 = vor.u32 %v303_v3, %v302_v13  ;;  %v308_v28 = vshll.u32 %v5185_v15, %v3275_v14  ;;  %v315_v29 = vshrl.u32 %v5181_v49, %v3293_v41 }
  0x9c   :  { %5231 = vst [vmem:[#allocation8_spill] sm:$0xff] %v3308_v50  ;;  %v3332_v61 = vsel %vm451_vm4, %v450_v51, 0  ;;  %v1070_v34 = vadd.s32 1, %v3139_v6  ;;  %v1225_v37 = vadd.s32 1, %v3142_v7  ;;  %v307_v38 = vor.u32 %v306_v18, %v305_v21 }
  0x9d   :  { %v3337_v5 = vand.u32 31, %v3332_v61  ;;  %v310_v39 = vor.u32 %v309_v19, %v308_v28  ;;  %v314_v44 = vshll.u32 %v5191_v47, %v3275_v14  ;;  %v326_v51 = vsel %vm320_vm5, %v313_v25, 920167782 }
  0x9e   :  { %vm1071_vm6 = vcmp.gt.s32.totalorder %v1070_v34, 0  ;;  %vm1226_vm7 = vcmp.gt.s32.totalorder %v1225_v37, 0  ;;  %v605_v52 = vadd.s32 1, %v3130_v26  ;;  %v335_v3 = vshrl.u32 %v3318_v55, 16 }
  0x9f   :  { %v3350_v20 = vsub.s32 32, %v3337_v5  ;;  %v3363_v9 = vshll.u32 %v5191_v47, %v3337_v5  ;;  %v3376_v59 = vsel %vm1071_vm6, %v1070_v34, 0  ;;  %v3378_v1 = vsel %vm1226_vm7, %v1225_v37, 0 }
  0xa0   :  { %5232 = vst [vmem:[#allocation9_spill] sm:$0xff] %v3376_v59  ;;  %v3382_v6 = vand.u32 31, %v3376_v59  ;;  %v316_v14 = vor.u32 %v315_v29, %v314_v44  ;;  %v3387_v7 = vand.u32 31, %v3378_v1  ;;  %v301_v10 = vshrl.u32 %v5189_v12, %v3293_v41 }
  0xa1   :  { %v3367_v33 = vshrl.u32 %v5181_v49, %v3350_v20  ;;  %5233 = vst [vmem:[#allocation10_spill] sm:$0xff] %v3378_v1  ;;  %v325_v13 = vsel %vm317_vm8, %v304_v27, %v307_v38  ;;  %v327_v18 = vsel %vm319_vm9, %v310_v39, %v326_v51  ;;  %v3394_v19 = vand.u32 31, %v3324_v57 }
  0xa2   :  { %5234 = vst [vmem:[#allocation11_spill] sm:$0xff] %v3382_v6  ;;  %v3397_v21 = vsub.s32 32, %v3382_v6  ;;  %v322_v26 = vsel %vm320_vm5, %v310_v39, 2102212464  ;;  %vm606_vm11 = vcmp.gt.s32.totalorder %v605_v52, 0  ;;  %v3403_v28 = vsub.s32 32, %v3387_v7 }
  0xa3   :  { %5235 = vst [vmem:[#allocation12_spill] sm:$0xff] %v3387_v7  ;;  %v321_v41 = vsel %vm317_vm8, %v301_v10, %v304_v27  ;;  %v329_v29 = vsel %vm317_vm8, %v307_v38, %v310_v39  ;;  %v3407_v34 = vshll.u32 %v5191_v47, %v3382_v6  ;;  %v328_v44 = vsel %vm318_vm10, %v325_v13, %v327_v18 }
  0xa4   :  { %5236 = vst [vmem:[#allocation13_spill] sm:$0xff] %v3397_v21  ;;  %v3411_v37 = vshrl.u32 %v5181_v49, %v3397_v21  ;;  %v330_v51 = vsel %vm320_vm5, %v316_v14, 1326507024  ;;  %v3419_v58 = vshll.u32 %v5191_v47, %v3387_v7  ;;  %v3423_v27 = vshrl.u32 %v5181_v49, %v3403_v28 }
  0xa5   :  { %5237 = vst [vmem:[#allocation14_spill] sm:$0xff] %v3403_v28  ;;  %v323_v39 = vsel %vm319_vm9, %v307_v38, %v322_v26  ;;  %v331_v10 = vsel %vm319_vm9, %v313_v25, %v330_v51  ;;  %v358_v18 = vand.u32 65535, %v328_v44  ;;  %v359_v40 = vshrl.u32 %v328_v44, 16 }
  0xa6   :  { %5238 = vst [vmem:[#allocation15_spill] sm:$0xff] %v3407_v34  ;;  %v332_v14 = vsel %vm318_vm10, %v329_v29, %v331_v10  ;;  %v3434_v45 = vsel %vm606_vm11, %v605_v52, 0  ;;  %v3439_v38 = vshrl.u32 %v3324_v57, 5  ;;  %v3442_v25 = vsub.s32 32, %v3394_v19 }
  0xa7   :  { %5239 = vst [vmem:[#allocation16_spill] sm:$0xff] %v3411_v37  ;;  %v336_v4 = vand.u32 65535, %v332_v14  ;;  %v337_v49 = vshrl.u32 %v332_v14, 16  ;;  %v3446_v26 = vsel %vm318_vm10, %v321_v41, %v323_v39  ;;  %v361_v29 = vmul.u32 %v359_v40, %v3355_v22 }
  0xa8   :  { %5240 = vst [vmem:[#allocation17_spill] sm:$0xff] %v3419_v58  ;;  %v3450_v52 = vshrl.u32 %v3279_v31, 5  ;;  %v3453_v44 = vshrl.u32 %v3281_v32, 5  ;;  %v3457_v51 = vshll.u32 %v5183_v8, %v3288_v36  ;;  %v3462_v10 = vshrl.u32 %v5191_v47, %v3299_v43 }
  0xa9   :  { %5241 = vst [vmem:[#allocation18_spill] sm:$0xff] %v3423_v27  ;;  %v339_v57 = vmul.u32 %v337_v49, %v3355_v22  ;;  %v3465_v11 = vand.u32 31, %v3434_v45  ;;  %v340_v41 = vmul.u32 %v336_v4, %v335_v3  ;;  %v362_v39 = vmul.u32 %v358_v18, %v335_v3 }
  0xaa   :  { %5242 = vst [vmem:[#allocation19_spill] sm:$0xff] %v3450_v52  ;;  %v338_v31 = vmul.u32 %v336_v4, %v3355_v22  ;;  %v360_v32 = vmul.u32 %v358_v18, %v3355_v22  ;;  %v364_v13 = vshll.u32 %v361_v29, 16  ;;  %v341_v60 = vmul.u32 %v337_v49, %v335_v3 }
  0xab   :  { %v342_v14 = vshll.u32 %v339_v57, 16  ;;  %v344_v8 = vshll.u32 %v340_v41, 16  ;;  %v363_v15 = vmul.u32 %v359_v40, %v335_v3  ;;  %v366_v2 = vshll.u32 %v362_v39, 16 }
  0xac   :  { %vm368_vm13 = vc.u32 %v360_v32, %v364_v13  ;;  %v370_v47 = vadd.s32 %v364_v13, %v360_v32  ;;  %v343_v0 = vshrl.u32 %v339_v57, 16  ;;  %v5243_v16 = vmov 0  }
  0xad   :  { %vm346_vm12 = vc.u32 %v338_v31, %v342_v14  ;;  %v348_v12 = vadd.s32 %v342_v14, %v338_v31  ;;  %v365_v37 = vshrl.u32 %v361_v29, 16  ;;  %v369_v58 = vsel %vm368_vm13, 1, %v5243_v16 }
  0xae   :  { %v347_v34 = vsel %vm346_vm12, 1, %v5243_v16  ;;  %v371_v4 = vadd.s32 %v369_v58, %v363_v15  ;;  %vm372_vm15 = vc.u32 %v370_v47, %v366_v2  ;;  %v345_v22 = vshrl.u32 %v340_v41, 16 }
  0xaf   :  { %v349_v27 = vadd.s32 %v347_v34, %v341_v60  ;;  %vm350_vm14 = vc.u32 %v348_v12, %v344_v8  ;;  %v367_v18 = vshrl.u32 %v362_v39, 16  ;;  %v373_v40 = vsel %vm372_vm15, 1, %v5243_v16 }
  0xb0   :  { %v351_v49 = vsel %vm350_vm14, 1, %v5243_v16  ;;  %v375_v31 = vadd.s32 %v373_v40, %v371_v4  ;;  %v5244_v13 = vmov 683565275   ;;  %v5245_v14 = vmov 2475754826  }
  0xb1   :  { %v353_v3 = vadd.s32 %v351_v49, %v349_v27  ;;  %v147_v57 = vshll.u32 %v5244_v13, %v3394_v19  ;;  %v148_v29 = vshrl.u32 %v5245_v14, %v3442_v25  ;;  %v150_v60 = vshll.u32 %v5245_v14, %v3394_v19 }
  0xb2   :  { %v5246_v58 = vmov 2131351028   ;;  %v5247_v15 = vmov 2102212464   ;;  %v3485_v41 = vadd.s32 %v370_v47, %v366_v2  ;;  %v376_v39 = vadd.s32 %v375_v31, %v365_v37 }
  0xb3   :  { %v151_v8 = vshrl.u32 %v5246_v58, %v3442_v25  ;;  %v153_v12 = vshll.u32 %v5246_v58, %v3394_v19  ;;  %v154_v34 = vshrl.u32 %v5247_v15, %v3442_v25  ;;  %v354_v27 = vadd.s32 %v353_v3, %v343_v0 }
  0xb4   :  { %v149_v32 = vor.u32 %v148_v29, %v147_v57  ;;  %v156_v40 = vshll.u32 %v5247_v15, %v3394_v19  ;;  %v5248_v24 = vmov 920167782   ;;  %v377_v28 = vadd.s32 %v376_v39, %v367_v18 }
  0xb5   :  { %v152_v4 = vor.u32 %v151_v8, %v150_v60  ;;  %v155_v49 = vor.u32 %v154_v34, %v153_v12  ;;  %v157_v21 = vshrl.u32 %v5248_v24, %v3442_v25  ;;  %v3491_v6 = vadd.s32 %v354_v27, %v345_v22 }
  0xb6   :  { %v159_v62 = vshll.u32 %v5248_v24, %v3394_v19  ;;  %v5249_v0 = vmov 1326507024   ;;  %v3498_v2 = vsub.s32 32, %v3465_v11  ;;  %v138_v37 = vor.u32 8388608, %v3322_v56 }
  0xb7   :  { %v160_v47 = vshrl.u32 %v5249_v0, %v3442_v25  ;;  %v158_v3 = vor.u32 %v157_v21, %v156_v40  ;;  %vm162_vm0 = vcmp.lt.s32.totalorder %v3439_v38, 1  ;;  %vm380_vm1 = vc.u32 %v3491_v6, %v3485_v41 }
  0xb8   :  { %v381_v22 = vadd.s32 1, %v377_v28  ;;  %vm165_vm2 = vcmp.lt.s32.totalorder %v3439_v38, 4  ;;  %v378_v19 = vmul.u32 %v3318_v55, %v3446_v26  ;;  %vm164_vm3 = vcmp.lt.s32.totalorder %v3439_v38, 3 }
  0xb9   :  { %v161_v31 = vor.u32 %v160_v47, %v159_v62  ;;  %v170_v18 = vsel %vm162_vm0, %v149_v32, %v152_v4  ;;  %v171_v56 = vsel %vm165_vm2, %v158_v3, 920167782  ;;  %vm163_vm4 = vcmp.lt.s32.totalorder %v3439_v38, 2 }
  0xba   :  { %v382_v21 = vsel %vm380_vm1, %v381_v22, %v377_v28  ;;  %v172_v57 = vsel %vm164_vm3, %v155_v49, %v171_v56  ;;  %v174_v62 = vsel %vm162_vm0, %v152_v4, %v155_v49  ;;  %v3519_v55 = vshll.u32 %v5247_v15, %v3285_v35 }
  0xbb   :  { %v383_v26 = vadd.s32 %v382_v21, %v378_v19  ;;  %v173_v29 = vsel %vm163_vm4, %v170_v18, %v172_v57  ;;  %v175_v60 = vsel %vm165_vm2, %v161_v31, 1326507024  ;;  %v3527_v28 = vshrl.u32 %v5248_v24, %v3296_v42 }
  0xbc   :  { %v3531_v8 = vor.u32 %v3462_v10, %v3457_v51  ;;  %v176_v12 = vsel %vm164_vm3, %v158_v3, %v175_v60  ;;  %v3535_v34 = vshll.u32 %v138_v37, 8  ;;  %v625_v27 = vshrl.u32 %v5249_v0, %v3498_v2 }
  0xbd   :  { %v384_v39 = vadd.s32 536870912, %v383_v26  ;;  %v177_v40 = vsel %vm163_vm4, %v174_v62, %v176_v12  ;;  %v204_v47 = vshrl.u32 %v173_v29, 16  ;;  %v3544_v10 = vshrl.u32 %v3434_v45, 5 }
  0xbe   :  { %v179_v22 = vand.u32 65535, %v3535_v34  ;;  %v180_v31 = vshrl.u32 %v3535_v34, 16  ;;  %v181_v19 = vand.u32 65535, %v177_v40  ;;  %v182_v51 = vshrl.u32 %v177_v40, 16 }
  0xbf   :  { %v624_v37 = vshll.u32 %v5248_v24, %v3465_v11  ;;  %v3548_v3 = vshrl.u32 %v384_v39, 30  ;;  %v203_v0 = vand.u32 65535, %v173_v29  ;;  %v146_v18 = vshrl.u32 %v5244_v13, %v3442_v25 }
  0xc0   :  { %v167_v56 = vsel %vm165_vm2, %v155_v49, 2102212464  ;;  %v184_v21 = vmul.u32 %v182_v51, %v179_v22  ;;  %v185_v57 = vmul.u32 %v181_v19, %v180_v31  ;;  %v621_v62 = vshll.u32 %v5247_v15, %v3465_v11 }
  0xc1   :  { %v622_v45 = vshrl.u32 %v5248_v24, %v3498_v2  ;;  %v386_v60 = vshll.u32 %v3548_v3, 30  ;;  %v206_v12 = vmul.u32 %v204_v47, %v179_v22  ;;  %v626_v39 = vor.u32 %v625_v27, %v624_v37 }
  0xc2   :  { %v166_v29 = vsel %vm162_vm0, %v146_v18, %v149_v32  ;;  %v183_v40 = vmul.u32 %v181_v19, %v179_v22  ;;  %v187_v25 = vshll.u32 %v184_v21, 16  ;;  %v168_v49 = vsel %vm164_vm3, %v152_v4, %v167_v56 }
  0xc3   :  { %v3561_v35 = vsub.s32 %v383_v26, %v386_v60  ;;  %v186_v42 = vmul.u32 %v182_v51, %v180_v31  ;;  %v207_v7 = vmul.u32 %v203_v0, %v180_v31  ;;  %v189_v1 = vshll.u32 %v185_v57, 16 }
  0xc4   :  { %vm191_vm5 = vc.u32 %v183_v40, %v187_v25  ;;  %v193_v59 = vadd.s32 %v187_v25, %v183_v40  ;;  %v209_v48 = vshll.u32 %v206_v12, 16  ;;  %v188_v19 = vshrl.u32 %v184_v21, 16 }
  0xc5   :  { %vm388_vm6 = vcmp.lt.s32.totalorder %v3561_v35, 0  ;;  %v389_v27 = vsub.s32 0, %v3561_v35  ;;  %v192_v37 = vsel %vm191_vm5, 1, %v5243_v16  ;;  %v205_v18 = vmul.u32 %v203_v0, %v179_v22 }
  0xc6   :  { %v194_v26 = vadd.s32 %v192_v37, %v186_v42  ;;  %vm195_vm7 = vc.u32 %v193_v59, %v189_v1  ;;  %v208_v56 = vmul.u32 %v204_v47, %v180_v31  ;;  %v211_v60 = vshll.u32 %v207_v7, 16 }
  0xc7   :  { %v390_v4 = vsel %vm388_vm6, %v389_v27, %v3561_v35  ;;  %v196_v51 = vsel %vm195_vm7, 1, %v5243_v16  ;;  %vm213_vm8 = vc.u32 %v205_v18, %v209_v48  ;;  %v215_v50 = vadd.s32 %v209_v48, %v205_v18 }
  0xc8   :  { %v391_v40 = vclz %v390_v4  ;;  %v198_v25 = vadd.s32 %v196_v51, %v194_v26  ;;  %v623_v52 = vor.u32 %v622_v45, %v621_v62  ;;  %vm630_vm9 = vcmp.lt.s32.totalorder %v3544_v10, 4 }
  0xc9   :  { %v169_v32 = vsel %vm163_vm4, %v166_v29, %v168_v49  ;;  %v214_v42 = vsel %vm213_vm8, 1, %v5243_v16  ;;  %vm217_vm10 = vc.u32 %v215_v50, %v211_v60  ;;  %v640_v47 = vsel %vm630_vm9, %v626_v39, 1326507024 }
  0xca   :  { %v3125_v59 = vadd.s32 4294967294, %v391_v40  ;;  %v199_v1 = vadd.s32 %v198_v25, %v188_v19  ;;  %v216_v22 = vadd.s32 %v214_v42, %v208_v56  ;;  %v190_v31 = vshrl.u32 %v185_v57, 16 }
  0xcb   :  { %v218_v0 = vsel %vm217_vm10, 1, %v5243_v16  ;;  %v5250_v48 = vand.u32 2147483647, %v3277_v17  ;;  %v379_v62 = vadd.s32 %v3485_v41, %v3491_v6  ;;  %v210_v38 = vshrl.u32 %v206_v12, 16 }
  0xcc   :  { %vm3126_vm11 = vcmp.lt.s32.totalorder %v3125_v59, 0  ;;  %v220_v45 = vadd.s32 %v218_v0, %v216_v22  ;;  %v3582_v49 = vadd.s32 %v199_v1, %v190_v31  ;;  %v212_v27 = vshrl.u32 %v207_v7, 16 }
  0xcd   :  { %v602_v21 = vand.u32 8388607, %v5250_v48  ;;  %v394_v29 = vsel %vm3126_vm11, 0, %v3125_v59  ;;  %v223_v37 = vmul.u32 %v3535_v34, %v169_v32  ;;  %vm287_vm12 = vcmp.lt.s32.totalorder %v3245_v30, 0 }
  0xce   :  { %v395_v57 = vsub.s32 32, %v394_v29  ;;  %v399_v39 = vsub.s32 4294967266, %v394_v29  ;;  %v3586_v19 = vadd.s32 %v215_v50, %v211_v60  ;;  %v221_v26 = vadd.s32 %v220_v45, %v210_v38 }
  0xcf   :  { %v603_v18 = vor.u32 8388608, %v602_v21  ;;  %v613_v6 = vshrl.u32 %v5245_v14, %v3498_v2  ;;  %v615_v41 = vshll.u32 %v5245_v14, %v3465_v11  ;;  %v616_v12 = vshrl.u32 %v5246_v58, %v3498_v2 }
  0xd0   :  { %v396_v7 = vshll.u32 %v3561_v35, %v394_v29  ;;  %v397_v34 = vshrl.u32 %v379_v62, %v395_v57  ;;  %v400_v32 = vadd.s32 127, %v399_v39  ;;  %v222_v4 = vadd.s32 %v221_v26, %v212_v27 }
  0xd1   :  { %v5251_v51 = vand.u32 2147483647, %v3245_v30  ;;  %vm225_vm14 = vc.u32 %v3582_v49, %v3586_v19  ;;  %v3603_v56 = vor.u32 %v616_v12, %v615_v41  ;;  %v618_v60 = vshll.u32 %v5246_v58, %v3465_v11 }
  0xd2   :  { %v619_v35 = vshrl.u32 %v5247_v15, %v3498_v2  ;;  %vm940_vm15 = vcmp.lt.s32.totalorder %v3453_v44, 4  ;;  %v398_v40 = vor.u32 %v397_v34, %v396_v7  ;;  %v401_v25 = vshll.u32 %v400_v32, 23 }
  0xd3   :  { %vm3597_vm13 = vcmp.le.f32.partialorder %v5251_v51, 0.7853982  ;;  %v226_v42 = vadd.s32 1, %v222_v4  ;;  %vm629_vm0 = vcmp.lt.s32.totalorder %v3544_v10, 3  ;;  %v409_v59 = vsub.s32 4, %v3548_v3 }
  0xd4   :  { %v612_v1 = vshll.u32 %v5244_v13, %v3465_v11  ;;  %v620_v22 = vor.u32 %v619_v35, %v618_v60  ;;  %v641_v31 = vsel %vm629_vm0, %v623_v52, %v640_v47  ;;  %v402_v0 = vor.u32 4788187, %v401_v25 }
  0xd5   :  { %v227_v48 = vsel %vm225_vm14, %v226_v42, %v222_v4  ;;  %vm627_vm1 = vcmp.lt.s32.totalorder %v3544_v10, 1  ;;  %v3617_v21 = vshll.u32 %v603_v18, 8  ;;  %vm628_vm2 = vcmp.lt.s32.totalorder %v3544_v10, 2 }
  0xd6   :  { %v228_v62 = vadd.s32 %v227_v48, %v223_v37  ;;  %v3619_v38 = vor.u32 %v613_v6, %v612_v1  ;;  %v639_v45 = vsel %vm627_vm1, %v3603_v56, %v620_v22  ;;  %v636_v11 = vsel %vm630_vm9, %v623_v52, 920167782 }
  0xd7   :  { %v403_v29 = vand.u32 2147483647, %v402_v0  ;;  %v405_v47 = vcvt.s32.f32 %v398_v40  ;;  %v642_v27 = vsel %vm628_vm2, %v639_v45, %v641_v31  ;;  %v3630_v57 = vshrl.u32 %v3332_v61, 5 }
  0xd8   :  { %v410_v37 = vsel %vm287_vm12, %v409_v59, %v3548_v3  ;;  %v229_v39 = vadd.s32 536870912, %v228_v62  ;;  %v3636_v26 = vand.u32 65535, %v3617_v21  ;;  %v3639_v6 = vshrl.u32 %v3617_v21, 16 }
  0xd9   :  { %v406_v18 = vmul.f32 %v405_v47, %v403_v29  ;;  %v646_v52 = vand.u32 65535, %v642_v27  ;;  %v647_v41 = vshrl.u32 %v642_v27, 16  ;;  %v467_v12 = vshrl.u32 %v5248_v24, %v3350_v20 }
  0xda   :  { %v3643_v7 = vshrl.u32 %v229_v39, 30  ;;  %v635_v61 = vsel %vm627_vm1, %v3619_v38, %v3603_v56  ;;  %v637_v3 = vsel %vm629_vm0, %v620_v22, %v636_v11  ;;  %v3653_v32 = vsel %vm3597_vm13, 0, %v410_v37 }
  0xdb   :  { %v407_v34 = vxor.u32 2147483648, %v406_v18  ;;  %v3656_v4 = vmul.u32 %v647_v41, %v3636_v26  ;;  %v3659_v51 = vmul.u32 %v646_v52, %v3639_v6  ;;  %v5254_v60 = vor.u32 %v3316_v54, %v3312_v53 }
  0xdc   :  { %v466_v40 = vshll.u32 %v5247_v15, %v3337_v5  ;;  %vm475_vm3 = vcmp.lt.s32.totalorder %v3630_v57, 4  ;;  %v231_v25 = vshll.u32 %v3643_v7, 30  ;;  %v638_v59 = vsel %vm628_vm2, %v635_v61, %v637_v3 }
  0xdd   :  { %v3666_v35 = vsel %vm940_vm15, %v5254_v60, 1326507024  ;;  %v408_v42 = vsel %vm287_vm12, %v407_v34, %v406_v18  ;;  %v648_v1 = vmul.u32 %v646_v52, %v3636_v26  ;;  %v652_v53 = vshll.u32 %v3656_v4, 16 }
  0xde   :  { %v3678_v54 = vor.u32 %v467_v12, %v466_v40  ;;  %v3683_v31 = vsel %vm3597_vm13, %v3245_v30, %v408_v42  ;;  %v429_v0 = vadd.s32 3, %v3653_v32  ;;  %v3686_v48 = vsub.s32 %v228_v62, %v231_v25 }
  0xdf   :  { %v413_v45 = vmul.f32 %v3683_v31, %v3683_v31  ;;  %v654_v11 = vshll.u32 %v3659_v51, 16  ;;  %vm656_vm4 = vc.u32 %v648_v1, %v652_v53  ;;  %v658_v29 = vadd.s32 %v652_v53, %v648_v1 }
  0xe0   :  { %v5255_v47 = vor.u32 %v3367_v33, %v3363_v9  ;;  %vm233_vm5 = vcmp.lt.s32.totalorder %v3686_v48, 0  ;;  %v234_v50 = vsub.s32 0, %v3686_v48  ;;  %v669_v62 = vshrl.u32 %v638_v59, 16 }
  0xe1   :  { %v414_v37 = vmul.f32 -0.001358992, %v413_v45  ;;  %v421_v39 = vmul.f32 -0.00019511016, %v413_v45  ;;  %v657_v18 = vsel %vm656_vm4, 1, %v5243_v16  ;;  %vm660_vm6 = vc.u32 %v658_v29, %v654_v11 }
  0xe2   :  { %v3696_v27 = vsel %vm475_vm3, %v5255_v47, 1326507024  ;;  %v3701_v52 = vand.u32 3, %v429_v0  ;;  %v235_v12 = vsel %vm233_vm5, %v234_v50, %v3686_v48  ;;  %v651_v9 = vmul.u32 %v647_v41, %v3639_v6 }
  0xe3   :  { %v668_v33 = vand.u32 65535, %v638_v59  ;;  %v415_v61 = vadd.f32 0.041655596, %v414_v37  ;;  %v422_v3 = vadd.f32 0.008332121, %v421_v39  ;;  %v236_v34 = vclz %v235_v12 }
  0xe4   :  { %v632_v60 = vsel %vm630_vm9, %v620_v22, 2102212464  ;;  %v611_v40 = vshrl.u32 %v5244_v13, %v3498_v2  ;;  %v659_v25 = vadd.s32 %v657_v18, %v651_v9  ;;  %v661_v42 = vsel %vm660_vm6, 1, %v5243_v16 }
  0xe5   :  { %v3711_v1 = vmul.u32 %v669_v62, %v3636_v26  ;;  %v416_v53 = vmul.f32 %v415_v61, %v413_v45  ;;  %v423_v0 = vmul.f32 %v422_v3, %v413_v45  ;;  %v224_v41 = vadd.s32 %v3586_v19, %v3582_v49 }
  0xe6   :  { %v3122_v59 = vadd.s32 4294967294, %v236_v34  ;;  %vm132_vm7 = vcmp.lt.s32.totalorder %v3249_v46, 0  ;;  %v631_v22 = vsel %vm627_vm1, %v611_v40, %v3619_v38  ;;  %v633_v2 = vsel %vm629_vm0, %v3603_v56, %v632_v60 }
  0xe7   :  { %v663_v11 = vadd.s32 %v661_v42, %v659_v25  ;;  %v672_v29 = vmul.u32 %v668_v33, %v3639_v6  ;;  %v417_v47 = vadd.f32 -0.4999988, %v416_v53  ;;  %v424_v50 = vadd.f32 -0.16666654, %v423_v0 }
  0xe8   :  { %vm3123_vm8 = vcmp.lt.s32.totalorder %v3122_v59, 0  ;;  %v674_v37 = vshll.u32 %v3711_v1, 16  ;;  %vm432_vm9 = vcmp.eq.s32.totalorder %v3701_v52, 0  ;;  %vm435_vm10 = vcmp.eq.s32.totalorder %v3701_v52, 2 }
  0xe9   :  { %v239_v49 = vsel %vm3123_vm8, 0, %v3122_v59  ;;  %v254_v19 = vsub.s32 4, %v3643_v7  ;;  %v653_v38 = vshrl.u32 %v3656_v4, 16  ;;  %v670_v39 = vmul.u32 %v668_v33, %v3636_v26 }
  0xea   :  { %v418_v56 = vmul.f32 %v417_v47, %v413_v45  ;;  %v425_v18 = vmul.f32 %v424_v50, %v413_v45  ;;  %vm431_vm11 = vcmp.lt.s32.totalorder %v3701_v52, 2  ;;  %v240_v12 = vsub.s32 32, %v239_v49 }
  0xeb   :  { %v673_v9 = vmul.u32 %v669_v62, %v3639_v6  ;;  %vm428_vm12 = vweird.f32 %v3245_v30  ;;  %v5256_v61 = vand.u32 2147483647, %v3249_v46  ;;  %v244_v34 = vsub.s32 4294967266, %v239_v49 }
  0xec   :  { %v664_v60 = vadd.s32 %v663_v11, %v653_v38  ;;  %v676_v4 = vshll.u32 %v672_v29, 16  ;;  %vm678_vm14 = vc.u32 %v670_v39, %v674_v37  ;;  %v3738_v26 = vadd.f32 1.0, %v418_v56 }
  0xed   :  { %vm3734_vm13 = vcmp.le.f32.partialorder %v5256_v61, 0.7853982  ;;  %v426_v45 = vadd.f32 1.0, %v425_v18  ;;  %v242_v33 = vshrl.u32 %v224_v41, %v240_v12  ;;  %v679_v40 = vsel %vm678_vm14, 1, %v5243_v16 }
  0xee   :  { %v241_v6 = vshll.u32 %v3686_v48, %v239_v49  ;;  %v245_v62 = vadd.s32 127, %v244_v34  ;;  %v680_v25 = vadd.s32 %v674_v37, %v670_v39  ;;  %v681_v42 = vadd.s32 %v679_v40, %v673_v9 }
  0xef   :  { %v3743_v53 = vmul.f32 %v426_v45, %v3683_v31  ;;  %v5224_v0 = vxor.u32 2147483648, %v3738_v26  ;;  %v634_v59 = vsel %vm628_vm2, %v631_v22, %v633_v2  ;;  %v440_v11 = vand.u32 2147483647, %v3266_v23 }
  0xf0   :  { %v243_v47 = vor.u32 %v242_v33, %v241_v6  ;;  %v246_v50 = vshll.u32 %v245_v62, 23  ;;  %v655_v41 = vshrl.u32 %v3659_v51, 16  ;;  %vm682_vm0 = vc.u32 %v680_v25, %v676_v4 }
  0xf1   :  { %v433_v48 = vxor.u32 2147483648, %v3743_v53  ;;  %v255_v37 = vsel %vm132_vm7, %v254_v19, %v3643_v7  ;;  %v675_v31 = vshrl.u32 %v3711_v1, 16  ;;  %v683_v49 = vsel %vm682_vm0, 1, %v5243_v16 }
  0xf2   :  { %v247_v38 = vor.u32 4788187, %v246_v50  ;;  %v3756_v10 = vadd.s32 %v664_v60, %v655_v41  ;;  %v677_v22 = vshrl.u32 %v672_v29, 16  ;;  %v685_v2 = vadd.s32 %v683_v49, %v681_v42 }
  0xf3   :  { %v434_v51 = vsel %vm432_vm9, %v3738_v26, %v433_v48  ;;  %v437_v7 = vsel %vm435_vm10, %v5224_v0, %v3743_v53  ;;  %v684_v1 = vadd.s32 %v680_v25, %v676_v4  ;;  %v447_v19 = vand.u32 8388607, %v440_v11 }
  0xf4   :  { %v438_v29 = vsel %vm431_vm11, %v434_v51, %v437_v7  ;;  %v248_v39 = vand.u32 2147483647, %v247_v38  ;;  %v250_v56 = vcvt.s32.f32 %v243_v47  ;;  %v686_v18 = vadd.s32 %v685_v2, %v675_v31 }
  0xf5   :  { %v439_v12 = vsel %vm428_vm12, nan, %v438_v29  ;;  %v257_v9 = vsel %vm3734_vm13, 0, %v255_v37  ;;  %v458_v61 = vshrl.u32 %v5245_v14, %v3350_v20  ;;  %v461_v34 = vshrl.u32 %v5246_v58, %v3350_v20 }
  0xf6   :  { %2699 = vxpose.xlu2.b32.start [1/4] (short) %v439_v12, 128  ;;  %v251_v60 = vmul.f32 %v250_v56, %v248_v39  ;;  %v687_v4 = vadd.s32 %v686_v18, %v677_v22  ;;  %vm690_vm1 = vc.u32 %v3756_v10, %v684_v1  ;;  %v460_v52 = vshll.u32 %v5245_v14, %v3337_v5 }
  0xf7   :  { %v448_v45 = vor.u32 8388608, %v447_v19  ;;  %v457_v33 = vshll.u32 %v5244_v13, %v3337_v5  ;;  %v463_v40 = vshll.u32 %v5246_v58, %v3337_v5  ;;  %v464_v6 = vshrl.u32 %v5247_v15, %v3350_v20 }
  0xf8   :  { %v252_v62 = vxor.u32 2147483648, %v251_v60  ;;  %v691_v25 = vadd.s32 1, %v687_v4  ;;  %v462_v42 = vor.u32 %v461_v34, %v460_v52  ;;  %vm474_vm2 = vcmp.lt.s32.totalorder %v3630_v57, 3 }
  0xf9   :  { %v688_v47 = vmul.u32 %v3617_v21, %v634_v59  ;;  %v459_v50 = vor.u32 %v458_v61, %v457_v33  ;;  %v465_v41 = vor.u32 %v464_v6, %v463_v40  ;;  %v486_v37 = vsel %vm474_vm2, %v3678_v54, %v3696_v27 }
  0xfa   :  { %v481_v5 = vsel %vm475_vm3, %v3678_v54, 920167782  ;;  %v253_v31 = vsel %vm132_vm7, %v252_v62, %v251_v60  ;;  %v274_v49 = vadd.s32 3, %v257_v9  ;;  %v692_v38 = vsel %vm690_vm1, %v691_v25, %v687_v4 }
  0xfb   :  { %v3805_v21 = vsel %vm3734_vm13, %v3249_v46, %v253_v31  ;;  %v693_v59 = vadd.s32 %v692_v38, %v688_v47  ;;  %vm472_vm4 = vcmp.lt.s32.totalorder %v3630_v57, 1  ;;  %v3808_v27 = vshll.u32 %v448_v45, 8 }
  0xfc   :  { %v258_v54 = vmul.f32 %v3805_v21, %v3805_v21  ;;  %v3812_v22 = vand.u32 3, %v257_v9  ;;  %vm473_vm5 = vcmp.lt.s32.totalorder %v3630_v57, 2  ;;  %v484_v2 = vsel %vm472_vm4, %v462_v42, %v465_v41 }
  0xfd   :  { %v694_v51 = vadd.s32 536870912, %v693_v59  ;;  %v480_v3 = vsel %vm472_vm4, %v459_v50, %v462_v42  ;;  %v482_v7 = vsel %vm474_vm2, %v465_v41, %v481_v5  ;;  %v487_v19 = vsel %vm473_vm5, %v484_v2, %v486_v37 }
  0xfe   :  { %v259_v29 = vmul.f32 -0.001358992, %v258_v54  ;;  %v266_v39 = vmul.f32 -0.00019511016, %v258_v54  ;;  %v3823_v56 = vand.u32 3, %v274_v49  ;;  %v491_v18 = vand.u32 65535, %v487_v19 }
  0xff   :  { %v3825_v12 = vshrl.u32 %v694_v51, 30  ;;  %v489_v9 = vand.u32 65535, %v3808_v27  ;;  %v490_v61 = vshrl.u32 %v3808_v27, 16  ;;  %v492_v34 = vshrl.u32 %v487_v19, 16 }
 0x100   :  { %v260_v60 = vadd.f32 0.041655596, %v259_v29  ;;  %v267_v4 = vadd.f32 0.008332121, %v266_v39  ;;  %v456_v52 = vshrl.u32 %v5244_v13, %v3350_v20  ;;  %v483_v45 = vsel %vm473_vm5, %v480_v3, %v482_v7 }
 0x101   :  { %v696_v33 = vshll.u32 %v3825_v12, 30  ;;  %v477_v40 = vsel %vm475_vm3, %v465_v41, 2102212464  ;;  %v494_v6 = vmul.u32 %v492_v34, %v489_v9  ;;  %v3836_v62 = vmul.u32 %v491_v18, %v490_v61 }
 0x102   :  { %v261_v25 = vmul.f32 %v260_v60, %v258_v54  ;;  %v268_v47 = vmul.f32 %v267_v4, %v258_v54  ;;  %v3839_v37 = vadd.s32 %v684_v1, %v3756_v10  ;;  %v476_v5 = vsel %vm472_vm4, %v456_v52, %v459_v50 }
 0x103   :  { %v3843_v20 = vsub.s32 %v693_v59, %v696_v33  ;;  %v493_v31 = vmul.u32 %v491_v18, %v489_v9  ;;  %v497_v49 = vshll.u32 %v494_v6, 16  ;;  %v514_v38 = vshrl.u32 %v483_v45, 16 }
 0x104   :  { %v262_v2 = vadd.f32 -0.4999988, %v261_v25  ;;  %v269_v51 = vadd.f32 -0.16666654, %v268_v47  ;;  %vm1519_vm3 = vcmp.eq.s32.totalorder %v3812_v22, 2  ;;  %vm280_vm6 = vcmp.eq.s32.totalorder %v3823_v56, 2 }
 0x105   :  { %v478_v41 = vsel %vm474_vm2, %v462_v42, %v477_v40  ;;  %v496_v3 = vmul.u32 %v492_v34, %v490_v61  ;;  %vm1516_vm7 = vcmp.eq.s32.totalorder %v3812_v22, 0  ;;  %vm277_vm8 = vcmp.eq.s32.totalorder %v3823_v56, 0 }
 0x106   :  { %vm698_vm9 = vcmp.lt.s32.totalorder %v3843_v20, 0  ;;  %v699_v10 = vsub.s32 0, %v3843_v20  ;;  %v499_v1 = vshll.u32 %v3836_v62, 16  ;;  %vm501_vm10 = vc.u32 %v493_v31, %v497_v49 }
 0x107   :  { %v263_v50 = vmul.f32 %v262_v2, %v258_v54  ;;  %v270_v59 = vmul.f32 %v269_v51, %v258_v54  ;;  %vm1515_vm11 = vcmp.lt.s32.totalorder %v3812_v22, 2  ;;  %vm276_vm13 = vcmp.lt.s32.totalorder %v3823_v56, 2 }
 0x108   :  { %v502_v42 = vsel %vm501_vm10, 1, %v5243_v16  ;;  %v503_v7 = vadd.s32 %v497_v49, %v493_v31  ;;  %vm273_vm14 = vweird.f32 %v3249_v46  ;;  %v700_v19 = vsel %vm698_vm9, %v699_v10, %v3843_v20 }
 0x109   :  { %v504_v29 = vadd.s32 %v502_v42, %v496_v3  ;;  %v513_v39 = vand.u32 65535, %v483_v45  ;;  %v3859_v18 = vmul.u32 %v514_v38, %v489_v9  ;;  %v264_v34 = vadd.f32 1.0, %v263_v50 }
 0x10a   :  { %v271_v60 = vadd.f32 1.0, %v270_v59  ;;  %v701_v4 = vclz %v700_v19  ;;  %vm505_vm0 = vc.u32 %v503_v7, %v499_v1  ;;  %vm597_vm1 = vcmp.lt.s32.totalorder %v3277_v17, 0 }
 0x10b   :  { %v719_v54 = vsub.s32 4, %v3825_v12  ;;  %v3865_v52 = vsel %vm473_vm5, %v476_v5, %v478_v41  ;;  %v506_v33 = vsel %vm505_vm0, 1, %v5243_v16  ;;  %v905_v40 = vand.u32 2147483647, %v3257_v63 }
 0x10c   :  { %v272_v45 = vmul.f32 %v271_v60, %v3805_v21  ;;  %v281_v25 = vxor.u32 2147483648, %v264_v34  ;;  %v3131_v47 = vadd.s32 4294967294, %v701_v4  ;;  %v508_v31 = vadd.s32 %v506_v33, %v504_v29 }
 0x10d   :  { %v498_v49 = vshrl.u32 %v494_v6, 16  ;;  %v500_v2 = vshrl.u32 %v3836_v62, 16  ;;  %v515_v51 = vmul.u32 %v513_v39, %v489_v9  ;;  %v517_v3 = vmul.u32 %v513_v39, %v490_v61 }
 0x10e   :  { %v278_v10 = vxor.u32 2147483648, %v272_v45  ;;  %vm3132_vm2 = vcmp.lt.s32.totalorder %v3131_v47, 0  ;;  %v518_v1 = vmul.u32 %v514_v38, %v490_v61  ;;  %v519_v57 = vshll.u32 %v3859_v18, 16 }
 0x10f   :  { %v1521_v5 = vsel %vm1519_vm3, %v281_v25, %v272_v45  ;;  %v282_v41 = vsel %vm280_vm6, %v281_v25, %v272_v45  ;;  %v704_v21 = vsel %vm3132_vm2, 0, %v3131_v47  ;;  %v509_v50 = vadd.s32 %v508_v31, %v498_v49 }
 0x110   :  { %v1518_v6 = vsel %vm1516_vm7, %v264_v34, %v278_v10  ;;  %v279_v9 = vsel %vm277_vm8, %v264_v34, %v278_v10  ;;  %v705_v62 = vsub.s32 32, %v704_v21  ;;  %v521_v59 = vshll.u32 %v517_v3, 16 }
 0x111   :  { %v1522_v61 = vsel %vm1515_vm11, %v1518_v6, %v1521_v5  ;;  %v283_v38 = vsel %vm276_vm13, %v279_v9, %v282_v41  ;;  %v706_v42 = vshll.u32 %v3843_v20, %v704_v21  ;;  %v709_v7 = vsub.s32 4294967266, %v704_v21 }
 0x112   :  { %v1523_v19 = vsel %vm273_vm14, nan, %v1522_v61  ;;  %v284_v29 = vsel %vm273_vm14, nan, %v283_v38  ;;  %v707_v39 = vshrl.u32 %v3839_v37, %v705_v62  ;;  %vm523_vm4 = vc.u32 %v515_v51, %v519_v57 }
 0x113   :  { %2892 = vxpose.xlu0.b32.start [1/4] (short) %v1523_v19, 128  ;;  %2667 = vxpose.xlu1.b32.start [1/4] (short) %v284_v29, 128  ;;  %v710_v34 = vadd.s32 127, %v709_v7  ;;  %v510_v22 = vadd.s32 %v509_v50, %v500_v2  ;;  %v524_v60 = vsel %vm523_vm4, 1, %v5243_v16  ;;  %v525_v56 = vadd.s32 %v519_v57, %v515_v51 }
 0x114   :  { %v708_v4 = vor.u32 %v707_v39, %v706_v42  ;;  %v720_v20 = vsel %vm597_vm1, %v719_v54, %v3825_v12  ;;  %v520_v33 = vshrl.u32 %v3859_v18, 16  ;;  %v526_v45 = vadd.s32 %v524_v60, %v518_v1 }
 0x115   :  { %v711_v46 = vshll.u32 %v710_v34, 23  ;;  %vm527_vm5 = vc.u32 %v525_v56, %v521_v59  ;;  %v529_v25 = vadd.s32 %v525_v56, %v521_v59  ;;  %v912_v37 = vand.u32 8388607, %v905_v40 }
 0x116   :  { %v715_v47 = vcvt.s32.f32 %v708_v4  ;;  %v522_v31 = vshrl.u32 %v517_v3, 16  ;;  %v528_v49 = vsel %vm527_vm5, 1, %v5243_v16  ;;  %v922_v2 = vshll.u32 %v5244_v13, %v3288_v36 }
 0x117   :  { %v712_v51 = vor.u32 4788187, %v711_v46  ;;  %v530_v10 = vadd.s32 %v528_v49, %v526_v45  ;;  %v3900_v57 = vadd.s32 %v529_v25, %v510_v22  ;;  %vm535_vm3 = vc.u32 %v510_v22, %v529_v25  ;;  %v5264_v49 = vld [vmem:[#allocation7_spill] sm:$0xff] }
 0x118   :  { %v913_v12 = vor.u32 8388608, %v912_v37  ;;  %v923_v18 = vshrl.u32 %v5245_v14, %v3299_v43  ;;  %v925_v54 = vshll.u32 %v5245_v14, %v3288_v36  ;;  %v926_v3 = vshrl.u32 %v5246_v58, %v3299_v43 }
 0x119   :  { %v713_v1 = vand.u32 2147483647, %v712_v51  ;;  %v531_v5 = vadd.s32 %v530_v10, %v520_v33  ;;  %v928_v41 = vshll.u32 %v5246_v58, %v3288_v36  ;;  %v929_v21 = vshrl.u32 %v5247_v15, %v3299_v43 }
 0x11a   :  { %v946_v50 = vsel %vm940_vm15, %v3531_v8, 920167782  ;;  %v5259_v6 = vand.u32 2147483647, %v3277_v17  ;;  %v3921_v62 = vor.u32 %v923_v18, %v922_v2  ;;  %v3923_v59 = vor.u32 %v926_v3, %v925_v54 }
 0x11b   :  { %v716_v61 = vmul.f32 %v715_v47, %v713_v1  ;;  %v532_v38 = vadd.s32 %v531_v5, %v522_v31  ;;  %v930_v36 = vor.u32 %v929_v21, %v928_v41  ;;  %vm939_vm7 = vcmp.lt.s32.totalorder %v3453_v44, 3  ;;  %v5263_v31 = vld [vmem:[#allocation8_spill] sm:$0xff] }
 0x11c   :  { %vm3917_vm6 = vcmp.le.f32.partialorder %v5259_v6, 0.7853982  ;;  %v3928_v42 = vor.u32 %v3527_v28, %v3519_v55  ;;  %v533_v19 = vmul.u32 %v3808_v27, %v3865_v52  ;;  %v951_v29 = vsel %vm939_vm7, %v3531_v8, %v3666_v35  ;;  %v5262_v35 = vld [vmem:[#allocation19_spill] sm:$0xff] }
 0x11d   :  { %v3932_v7 = vsel %vm3917_vm6, 0, %v720_v20  ;;  %v717_v39 = vxor.u32 2147483648, %v716_v61  ;;  %v536_v34 = vadd.s32 1, %v532_v38  ;;  %vm937_vm8 = vcmp.lt.s32.totalorder %v3453_v44, 1 }
 0x11e   :  { %v3941_v60 = vshll.u32 %v913_v12, 8  ;;  %vm938_vm9 = vcmp.lt.s32.totalorder %v3453_v44, 2  ;;  %v945_v55 = vsel %vm937_vm8, %v3921_v62, %v3923_v59  ;;  %v947_v28 = vsel %vm939_vm7, %v930_v36, %v946_v50 }
 0x11f   :  { %v949_v8 = vsel %vm937_vm8, %v3923_v59, %v930_v36  ;;  %vm785_vm10 = vcmp.lt.s32.totalorder %v5262_v35, 4  ;;  %v718_v27 = vsel %vm597_vm1, %v717_v39, %v716_v61  ;;  %v537_v52 = vsel %vm535_vm3, %v536_v34, %v532_v38  ;;  %v5266_v38 = vld [vmem:[#allocation9_spill] sm:$0xff]  ;;  %v5268_v34 = vld [vmem:[#allocation12_spill] sm:$0xff] }
 0x120   :  { %v952_v56 = vsel %vm938_vm9, %v949_v8, %v951_v29  ;;  %v3962_v4 = vsel %vm3917_vm6, %v3277_v17, %v718_v27  ;;  %v739_v20 = vadd.s32 3, %v3932_v7  ;;  %v538_v33 = vadd.s32 %v537_v52, %v533_v19  ;;  %v5267_v29 = vld [vmem:[#allocation10_spill] sm:$0xff] }
 0x121   :  { %v956_v45 = vand.u32 65535, %v952_v56  ;;  %v723_v46 = vmul.f32 %v3962_v4, %v3962_v4  ;;  %v3969_v37 = vsel %vm938_vm9, %v945_v55, %v947_v28  ;;  %v954_v22 = vand.u32 65535, %v3941_v60 }
 0x122   :  { %v957_v25 = vshrl.u32 %v952_v56, 16  ;;  %v3975_v47 = vsel %vm785_vm10, %v3928_v42, 920167782  ;;  %v5265_v2 = vor.u32 %v5263_v31, %v5264_v49  ;;  %v539_v10 = vadd.s32 536870912, %v538_v33 }
 0x123   :  { %v724_v12 = vmul.f32 -0.001358992, %v723_v46  ;;  %v731_v18 = vmul.f32 -0.00019511016, %v723_v46  ;;  %v955_v54 = vshrl.u32 %v3941_v60, 16  ;;  %v3987_v1 = vand.u32 3, %v739_v20 }
 0x124   :  { %v3982_v51 = vsel %vm785_vm10, %v5265_v2, 1326507024  ;;  %v3985_v3 = vmul.u32 %v957_v25, %v954_v22  ;;  %v3989_v5 = vshrl.u32 %v539_v10, 30  ;;  %v958_v41 = vmul.u32 %v956_v45, %v954_v22 }
 0x125   :  { %v979_v21 = vshrl.u32 %v3969_v37, 16  ;;  %v725_v50 = vadd.f32 0.041655596, %v724_v12  ;;  %v732_v6 = vadd.f32 0.008332121, %v731_v18  ;;  %v3992_v9 = vmul.u32 %v956_v45, %v955_v54 }
 0x126   :  { %v962_v61 = vshll.u32 %v3985_v3, 16  ;;  %v3996_v19 = vshrl.u32 %v5266_v38, 5  ;;  %v3999_v39 = vshrl.u32 %v5267_v29, 5  ;;  %v4003_v55 = vshll.u32 %v5247_v15, %v5268_v34 }
 0x127   :  { %v541_v28 = vshll.u32 %v3989_v5, 30  ;;  %v726_v8 = vmul.f32 %v725_v50, %v723_v46  ;;  %v733_v27 = vmul.f32 %v732_v6, %v723_v46  ;;  %vm745_vm13 = vcmp.eq.s32.totalorder %v3987_v1, 2 }
 0x128   :  { %vm966_vm11 = vc.u32 %v958_v41, %v962_v61  ;;  %v968_v52 = vadd.s32 %v962_v61, %v958_v41  ;;  %v921_v20 = vshrl.u32 %v5244_v13, %v3299_v43  ;;  %v978_v45 = vand.u32 65535, %v3969_v37 }
 0x129   :  { %v4007_v56 = vsub.s32 %v538_v33, %v541_v28  ;;  %v4012_v31 = vmul.u32 %v979_v21, %v954_v22  ;;  %v727_v49 = vadd.f32 -0.4999988, %v726_v8  ;;  %v734_v2 = vadd.f32 -0.16666654, %v733_v27 }
 0x12a   :  { %v964_v10 = vshll.u32 %v3992_v9, 16  ;;  %v967_v12 = vsel %vm966_vm11, 1, %v5243_v16  ;;  %vm742_vm14 = vcmp.eq.s32.totalorder %v3987_v1, 0  ;;  %v942_v18 = vsel %vm940_vm15, %v930_v36, 2102212464 }
 0x12b   :  { %vm543_vm0 = vcmp.lt.s32.totalorder %v4007_v56, 0  ;;  %v544_v33 = vsub.s32 0, %v4007_v56  ;;  %v961_v43 = vmul.u32 %v957_v25, %v955_v54  ;;  %v728_v41 = vmul.f32 %v727_v49, %v723_v46 }
 0x12c   :  { %v735_v37 = vmul.f32 %v734_v2, %v723_v46  ;;  %vm741_vm1 = vcmp.lt.s32.totalorder %v3987_v1, 2  ;;  %v941_v50 = vsel %vm937_vm8, %v921_v20, %v3921_v62  ;;  %vm970_vm2 = vc.u32 %v968_v52, %v964_v10  ;;  %v5276_v1 = vld [vmem:[#allocation13_spill] sm:$0xff] }
 0x12d   :  { %vm738_vm4 = vweird.f32 %v3277_v17  ;;  %v545_v6 = vsel %vm543_vm0, %v544_v33, %v4007_v56  ;;  %v969_v61 = vadd.s32 %v967_v12, %v961_v43  ;;  %v982_v38 = vmul.u32 %v978_v45, %v955_v54 }
 0x12e   :  { %v984_v29 = vshll.u32 %v4012_v31, 16  ;;  %v4028_v28 = vadd.f32 1.0, %v728_v41  ;;  %v736_v36 = vadd.f32 1.0, %v735_v37  ;;  %v546_v25 = vclz %v545_v6 }
 0x12f   :  { %v943_v46 = vsel %vm939_vm7, %v3923_v59, %v942_v18  ;;  %v963_v8 = vshrl.u32 %v3985_v3, 16  ;;  %v965_v62 = vshrl.u32 %v3992_v9, 16  ;;  %v971_v27 = vsel %vm970_vm2, 1, %v5243_v16 }
 0x130   :  { %v980_v52 = vmul.u32 %v978_v45, %v954_v22  ;;  %v4037_v20 = vmul.f32 %v736_v36, %v3962_v4  ;;  %v5222_v49 = vxor.u32 2147483648, %v4028_v28  ;;  %v3128_v2 = vadd.s32 4294967294, %v546_v25 }
 0x131   :  { %v564_v10 = vsub.s32 4, %v3989_v5  ;;  %vm442_vm15 = vcmp.lt.s32.totalorder %v3266_v23, 0  ;;  %v973_v12 = vadd.s32 %v971_v27, %v969_v61  ;;  %v983_v33 = vmul.u32 %v979_v21, %v955_v54 }
 0x132   :  { %v986_v59 = vshll.u32 %v982_v38, 16  ;;  %vm988_vm5 = vc.u32 %v980_v52, %v984_v29  ;;  %v5223_v3 = vxor.u32 2147483648, %v4037_v20  ;;  %v747_v4 = vsel %vm745_vm13, %v5222_v49, %v4037_v20 }
 0x133   :  { %vm3129_vm3 = vcmp.lt.s32.totalorder %v3128_v2, 0  ;;  %v989_v22 = vsel %vm988_vm5, 1, %v5243_v16  ;;  %v974_v45 = vadd.s32 %v973_v12, %v963_v8  ;;  %v990_v18 = vadd.s32 %v984_v29, %v980_v52 }
 0x134   :  { %v549_v9 = vsel %vm3129_vm3, 0, %v3128_v2  ;;  %v991_v43 = vadd.s32 %v989_v22, %v983_v33  ;;  %v744_v54 = vsel %vm742_vm14, %v4028_v28, %v5223_v3  ;;  %v985_v52 = vshrl.u32 %v4012_v31, 16  ;;  %v5271_v33 = vld [vmem:[#allocation2_spill] sm:$0xff] }
 0x135   :  { %v550_v21 = vsub.s32 32, %v549_v9  ;;  %v551_v41 = vshll.u32 %v4007_v56, %v549_v9  ;;  %v554_v37 = vsub.s32 4294967266, %v549_v9  ;;  %v748_v6 = vsel %vm741_vm1, %v744_v54, %v747_v4  ;;  %v5272_v31 = vld [vmem:[#allocation6_spill] sm:$0xff] }
 0x136   :  { %v975_v61 = vadd.s32 %v974_v45, %v965_v62  ;;  %vm992_vm6 = vc.u32 %v990_v18, %v986_v59  ;;  %v994_v36 = vadd.s32 %v990_v18, %v986_v59  ;;  %v749_v29 = vsel %vm738_vm4, nan, %v748_v6 }
 0x137   :  { %v552_v25 = vshrl.u32 %v3900_v57, %v550_v21  ;;  %v555_v8 = vadd.s32 127, %v554_v37  ;;  %v993_v27 = vsel %vm992_vm6, 1, %v5243_v16  ;;  %2700 = vxpose.xlu2.b32.cont [2/4] (short) %v749_v29, 128  ;;  %vm4066_vm8 = vcmp.le.f32.partialorder %v440_v11, 0.7853982 }
 0x138   :  { %v995_v2 = vadd.s32 %v993_v27, %v991_v43  ;;  %v4062_v56 = vadd.s32 %v994_v36, %v975_v61  ;;  %vm1000_vm7 = vc.u32 %v975_v61, %v994_v36  ;;  %v750_v57 = vand.u32 2147483647, %v5271_v33  ;;  %v5273_v43 = vld [vmem:[#allocation5_spill] sm:$0xff] }
 0x139   :  { %v553_v62 = vor.u32 %v552_v25, %v551_v41  ;;  %v556_v12 = vshll.u32 %v555_v8, 23  ;;  %v944_v59 = vsel %vm938_vm9, %v941_v50, %v943_v46  ;;  %v987_v4 = vshrl.u32 %v982_v38, 16 }
 0x13a   :  { %v996_v22 = vadd.s32 %v995_v2, %v985_v52  ;;  %v768_v9 = vshrl.u32 %v5245_v14, %v5272_v31  ;;  %v565_v11 = vsel %vm442_vm15, %v564_v10, %v3989_v5  ;;  %v757_v18 = vand.u32 8388607, %v750_v57  ;;  %v5274_v2 = vld [vmem:[#allocation14_spill] sm:$0xff] }
 0x13b   :  { %v557_v45 = vor.u32 4788187, %v556_v12  ;;  %v767_v54 = vshll.u32 %v5244_v13, %v5273_v43  ;;  %v560_v21 = vcvt.s32.f32 %v553_v62  ;;  %v770_v44 = vshll.u32 %v5245_v14, %v5273_v43 }
 0x13c   :  { %v997_v41 = vadd.s32 %v996_v22, %v987_v4  ;;  %v771_v50 = vshrl.u32 %v5246_v58, %v5272_v31  ;;  %v758_v46 = vor.u32 8388608, %v757_v18  ;;  %v773_v37 = vshll.u32 %v5246_v58, %v5273_v43 }
 0x13d   :  { %v558_v38 = vand.u32 2147483647, %v557_v45  ;;  %v774_v5 = vshrl.u32 %v5247_v15, %v5272_v31  ;;  %v567_v10 = vsel %vm4066_vm8, 0, %v565_v11  ;;  %v4092_v29 = vor.u32 %v768_v9, %v767_v54 }
 0x13e   :  { %v1001_v6 = vadd.s32 1, %v997_v41  ;;  %v4094_v25 = vor.u32 %v771_v50, %v770_v44  ;;  %v998_v27 = vmul.u32 %v3941_v60, %v944_v59  ;;  %vm784_vm9 = vcmp.lt.s32.totalorder %v5262_v35, 3 }
 0x13f   :  { %v561_v8 = vmul.f32 %v560_v21, %v558_v38  ;;  %v775_v52 = vor.u32 %v774_v5, %v773_v37  ;;  %v1242_v62 = vshrl.u32 %v5248_v24, %v5274_v2  ;;  %v796_v4 = vsel %vm784_vm9, %v3928_v42, %v3982_v51 }
 0x140   :  { %v1002_v12 = vsel %vm1000_vm7, %v1001_v6, %v997_v41  ;;  %v4105_v22 = vshll.u32 %v758_v46, 8  ;;  %v584_v45 = vadd.s32 3, %v567_v10  ;;  %vm782_vm11 = vcmp.lt.s32.totalorder %v5262_v35, 1  ;;  %v5275_v41 = vld [vmem:[#allocation11_spill] sm:$0xff] }
 0x141   :  { %v562_v9 = vxor.u32 2147483648, %v561_v8  ;;  %v1003_v11 = vadd.s32 %v1002_v12, %v998_v27  ;;  %vm783_vm13 = vcmp.lt.s32.totalorder %v5262_v35, 2  ;;  %v790_v60 = vsel %vm782_vm11, %v4092_v29, %v4094_v25 }
 0x142   :  { %v792_v61 = vsel %vm784_vm9, %v775_v52, %v3975_v47  ;;  %v794_v42 = vsel %vm782_vm11, %v4094_v25, %v775_v52  ;;  %v4124_v18 = vand.u32 65535, %v4105_v22  ;;  %v4132_v47 = vshrl.u32 %v4105_v22, 16 }
 0x143   :  { %v563_v51 = vsel %vm442_vm15, %v562_v9, %v561_v8  ;;  %v1004_v36 = vadd.s32 536870912, %v1003_v11  ;;  %v797_v59 = vsel %vm783_vm13, %v794_v42, %v796_v4  ;;  %v4136_v44 = vshll.u32 %v5247_v15, %v5275_v41 }
 0x144   :  { %v4129_v43 = vsel %vm4066_vm8, %v3266_v23, %v563_v51  ;;  %v801_v54 = vand.u32 65535, %v797_v59  ;;  %v802_v21 = vshrl.u32 %v797_v59, 16  ;;  %v793_v46 = vsel %vm783_vm13, %v790_v60, %v792_v61 }
 0x145   :  { %v568_v50 = vmul.f32 %v4129_v43, %v4129_v43  ;;  %v4140_v38 = vshrl.u32 %v1004_v36, 30  ;;  %v4146_v37 = vshrl.u32 %v5248_v24, %v5276_v1  ;;  %v4149_v5 = vor.u32 %v1242_v62, %v4003_v55 }
 0x146   :  { %v804_v6 = vmul.u32 %v802_v21, %v4124_v18  ;;  %v4153_v8 = vmul.u32 %v801_v54, %v4132_v47  ;;  %v4155_v4 = vand.u32 3, %v567_v10  ;;  %v4158_v42 = vand.u32 3, %v584_v45 }
 0x147   :  { %v569_v27 = vmul.f32 -0.001358992, %v568_v50  ;;  %v576_v12 = vmul.f32 -0.00019511016, %v568_v50  ;;  %v1006_v9 = vshll.u32 %v4140_v38, 30  ;;  %v803_v60 = vmul.u32 %v801_v54, %v4124_v18 }
 0x148   :  { %v807_v24 = vshll.u32 %v804_v6, 16  ;;  %v824_v61 = vshrl.u32 %v793_v46, 16  ;;  %v787_v36 = vsel %vm785_vm10, %v775_v52, 2102212464  ;;  %v806_v59 = vmul.u32 %v802_v21, %v4132_v47 }
 0x149   :  { %v570_v51 = vadd.f32 0.041655596, %v569_v27  ;;  %v577_v55 = vadd.f32 0.008332121, %v576_v12  ;;  %v4161_v62 = vsub.s32 %v1003_v11, %v1006_v9  ;;  %v809_v10 = vshll.u32 %v4153_v8, 16 }
 0x14a   :  { %vm811_vm14 = vc.u32 %v803_v60, %v807_v24  ;;  %v813_v49 = vadd.s32 %v807_v24, %v803_v60  ;;  %vm1827_vm1 = vcmp.eq.s32.totalorder %v4155_v4, 2  ;;  %v823_v27 = vand.u32 65535, %v793_v46 }
 0x14b   :  { %v571_v3 = vmul.f32 %v570_v51, %v568_v50  ;;  %v578_v45 = vmul.f32 %v577_v55, %v568_v50  ;;  %vm1008_vm0 = vcmp.lt.s32.totalorder %v4161_v62, 0  ;;  %v1009_v54 = vsub.s32 0, %v4161_v62 }
 0x14c   :  { %v812_v11 = vsel %vm811_vm14, 1, %v5243_v16  ;;  %vm815_vm2 = vc.u32 %v813_v49, %v809_v10  ;;  %v4172_v52 = vmul.u32 %v824_v61, %v4124_v18  ;;  %vm1824_vm10 = vcmp.eq.s32.totalorder %v4155_v4, 0 }
 0x14d   :  { %v572_v21 = vadd.f32 -0.4999988, %v571_v3  ;;  %v579_v12 = vadd.f32 -0.16666654, %v578_v45  ;;  %v1010_v9 = vsel %vm1008_vm0, %v1009_v54, %v4161_v62  ;;  %v814_v60 = vadd.s32 %v812_v11, %v806_v59 }
 0x14e   :  { %vm587_vm15 = vcmp.eq.s32.totalorder %v4158_v42, 0  ;;  %v1011_v24 = vclz %v1010_v9  ;;  %v766_v51 = vshrl.u32 %v5244_v13, %v5272_v31  ;;  %v816_v55 = vsel %vm815_vm2, 1, %v5243_v16 }
 0x14f   :  { %v573_v49 = vmul.f32 %v572_v21, %v568_v50  ;;  %v580_v46 = vmul.f32 %v579_v12, %v568_v50  ;;  %vm1823_vm5 = vcmp.lt.s32.totalorder %v4155_v4, 2  ;;  %vm586_vm3 = vcmp.lt.s32.totalorder %v4158_v42, 2 }
 0x150   :  { %vm590_vm6 = vcmp.eq.s32.totalorder %v4158_v42, 2  ;;  %v818_v3 = vadd.s32 %v816_v55, %v814_v60  ;;  %vm583_vm7 = vweird.f32 %v3266_v23  ;;  %v3137_v59 = vadd.s32 4294967294, %v1011_v24  ;;  %v5279_v23 = vld [vmem:[#allocation17_spill] sm:$0xff] }
 0x151   :  { %v786_v10 = vsel %vm782_vm11, %v766_v51, %v4092_v29  ;;  %v788_v31 = vsel %vm784_vm9, %v4094_v25, %v787_v36  ;;  %v827_v50 = vmul.u32 %v823_v27, %v4132_v47  ;;  %v574_v45 = vadd.f32 1.0, %v573_v49 }
 0x152   :  { %v581_v54 = vadd.f32 1.0, %v580_v46  ;;  %v808_v11 = vshrl.u32 %v804_v6, 16  ;;  %v829_v21 = vshll.u32 %v4172_v52, 16  ;;  %vm3138_vm8 = vcmp.lt.s32.totalorder %v3137_v59, 0 }
 0x153   :  { %v810_v12 = vshrl.u32 %v4153_v8, 16  ;;  %v825_v9 = vmul.u32 %v823_v27, %v4124_v18  ;;  %v828_v60 = vmul.u32 %v824_v61, %v4132_v47  ;;  %vm1250_vm11 = vcmp.lt.s32.totalorder %v3999_v39, 4 }
 0x154   :  { %v582_v29 = vmul.f32 %v581_v54, %v4129_v43  ;;  %v591_v24 = vxor.u32 2147483648, %v574_v45  ;;  %v1014_v25 = vsel %vm3138_vm8, 0, %v3137_v59  ;;  %v819_v36 = vadd.s32 %v818_v3, %v808_v11 }
 0x155   :  { %v1015_v51 = vsub.s32 32, %v1014_v25  ;;  %v1019_v55 = vsub.s32 4294967266, %v1014_v25  ;;  %v831_v49 = vshll.u32 %v827_v50, 16  ;;  %vm833_vm9 = vc.u32 %v825_v9, %v829_v21 }
 0x156   :  { %v588_v6 = vxor.u32 2147483648, %v582_v29  ;;  %v1829_v46 = vsel %vm1827_vm1, %v591_v24, %v582_v29  ;;  %v592_v18 = vsel %vm590_vm6, %v591_v24, %v582_v29  ;;  %v834_v47 = vsel %vm833_vm9, 1, %v5243_v16 }
 0x157   :  { %v1016_v8 = vshll.u32 %v4161_v62, %v1014_v25  ;;  %v1017_v43 = vshrl.u32 %v4062_v56, %v1015_v51  ;;  %v1020_v61 = vadd.s32 127, %v1019_v55  ;;  %v835_v27 = vadd.s32 %v829_v21, %v825_v9 }
 0x158   :  { %v1826_v3 = vsel %vm1824_vm10, %v574_v45, %v588_v6  ;;  %v589_v59 = vsel %vm587_vm15, %v574_v45, %v588_v6  ;;  %v820_v54 = vadd.s32 %v819_v36, %v810_v12  ;;  %v836_v11 = vadd.s32 %v834_v47, %v828_v60  ;;  %v5277_v60 = vld [vmem:[#allocation4_spill] sm:$0xff] }
 0x159   :  { %v1830_v0 = vsel %vm1823_vm5, %v1826_v3, %v1829_v46  ;;  %v593_v29 = vsel %vm586_vm3, %v589_v59, %v592_v18  ;;  %v1018_v24 = vor.u32 %v1017_v43, %v1016_v8  ;;  %v1021_v62 = vshll.u32 %v1020_v61, 23 }
 0x15a   :  { %v1831_v56 = vsel %vm583_vm7, nan, %v1830_v0  ;;  %v594_v21 = vsel %vm583_vm7, nan, %v593_v29  ;;  %vm837_vm14 = vc.u32 %v835_v27, %v831_v49  ;;  %v839_v9 = vadd.s32 %v835_v27, %v831_v49  ;;  %v5278_v0 = vld [vmem:[#allocation18_spill] sm:$0xff] }
 0x15b   :  { %2893 = vxpose.xlu0.b32.cont [2/4] (short) %v1831_v56, 128  ;;  %2668 = vxpose.xlu1.b32.cont [2/4] (short) %v594_v21, 128  ;;  %v1022_v45 = vor.u32 4788187, %v1021_v62  ;;  %v1029_v12 = vsub.s32 4, %v4140_v38  ;;  %v838_v4 = vsel %vm837_vm14, 1, %v5243_v16  ;;  %v1215_v42 = vand.u32 2147483647, %v5277_v60 }
 0x15c   :  { %v830_v25 = vshrl.u32 %v4172_v52, 16  ;;  %v840_v36 = vadd.s32 %v838_v4, %v836_v11  ;;  %v4220_v51 = vadd.s32 %v839_v9, %v820_v54  ;;  %vm845_vm0 = vc.u32 %v820_v54, %v839_v9 }
 0x15d   :  { %v5280_v55 = vor.u32 %v5278_v0, %v5279_v23  ;;  %v1023_v6 = vand.u32 2147483647, %v1022_v45  ;;  %v1025_v46 = vcvt.s32.f32 %v1018_v24  ;;  %v1222_v18 = vand.u32 8388607, %v1215_v42 }
 0x15e   :  { %vm907_vm1 = vcmp.lt.s32.totalorder %v3257_v63, 0  ;;  %v789_v52 = vsel %vm783_vm13, %v786_v10, %v788_v31  ;;  %v832_v47 = vshrl.u32 %v827_v50, 16  ;;  %v841_v8 = vadd.s32 %v840_v36, %v830_v25 }
 0x15f   :  { %v1260_v49 = vsel %vm1250_vm11, %v5280_v55, 1326507024  ;;  %v1026_v43 = vmul.f32 %v1025_v46, %v1023_v6  ;;  %v1030_v61 = vsel %vm907_vm1, %v1029_v12, %v4140_v38  ;;  %v1235_v27 = vshll.u32 %v5245_v14, %v5268_v34 }
 0x160   :  { %v1236_v3 = vshrl.u32 %v5246_v58, %v5274_v2  ;;  %v842_v59 = vadd.s32 %v841_v8, %v832_v47  ;;  %v1223_v11 = vor.u32 8388608, %v1222_v18  ;;  %v1238_v29 = vshll.u32 %v5246_v58, %v5268_v34 }
 0x161   :  { %v1239_v35 = vshrl.u32 %v5247_v15, %v5274_v2  ;;  %vm906_vm13 = vcmp.le.f32.partialorder %v905_v40, 0.7853982  ;;  %v1027_v10 = vxor.u32 2147483648, %v1026_v43  ;;  %v1233_v38 = vshrl.u32 %v5245_v14, %v5274_v2 }
 0x162   :  { %vm1249_vm2 = vcmp.lt.s32.totalorder %v3999_v39, 3  ;;  %v846_v31 = vadd.s32 1, %v842_v59  ;;  %v4248_v50 = vor.u32 %v1236_v3, %v1235_v27  ;;  %v4257_v56 = vor.u32 %v4146_v37, %v4136_v44 }
 0x163   :  { %v4250_v24 = vor.u32 %v1239_v35, %v1238_v29  ;;  %v1261_v62 = vsel %vm1249_vm2, %v4149_v5, %v1260_v49  ;;  %v1028_v40 = vsel %vm907_vm1, %v1027_v10, %v1026_v43  ;;  %v4261_v21 = vsel %vm906_vm13, 0, %v1030_v61 }
 0x164   :  { %v843_v45 = vmul.u32 %v4105_v22, %v789_v52  ;;  %v1031_v12 = vsel %vm906_vm13, %v3257_v63, %v1028_v40  ;;  %v847_v4 = vsel %vm845_vm0, %v846_v31, %v842_v59  ;;  %v1232_v25 = vshll.u32 %v5244_v13, %v5268_v34  ;;  %v5282_v31 = vld [vmem:[#allocation15_spill] sm:$0xff] }
 0x165   :  { %v4268_v36 = vshll.u32 %v1223_v11, 8  ;;  %v1256_v44 = vsel %vm1250_vm11, %v4149_v5, 920167782  ;;  %v1033_v37 = vmul.f32 %v1031_v12, %v1031_v12  ;;  %vm1247_vm10 = vcmp.lt.s32.totalorder %v3999_v39, 1 }
 0x166   :  { %v848_v0 = vadd.s32 %v847_v4, %v843_v45  ;;  %v1049_v23 = vadd.s32 3, %v4261_v21  ;;  %v1234_v22 = vor.u32 %v1233_v38, %v1232_v25  ;;  %vm1248_vm15 = vcmp.lt.s32.totalorder %v3999_v39, 2  ;;  %v5281_v38 = vld [vmem:[#allocation16_spill] sm:$0xff] }
 0x167   :  { %v1259_v34 = vsel %vm1247_vm10, %v4248_v50, %v4250_v24  ;;  %v1034_v54 = vmul.f32 -0.001358992, %v1033_v37  ;;  %v1041_v9 = vmul.f32 -0.00019511016, %v1033_v37  ;;  %v4283_v49 = vand.u32 65535, %v4268_v36 }
 0x168   :  { %v849_v55 = vadd.s32 536870912, %v848_v0  ;;  %v1262_v5 = vsel %vm1248_vm15, %v1259_v34, %v1261_v62  ;;  %v4286_v6 = vshrl.u32 %v4268_v36, 16  ;;  %vm1095_vm5 = vcmp.lt.s32.totalorder %v3996_v19, 4 }
 0x169   :  { %v1266_v46 = vand.u32 65535, %v1262_v5  ;;  %v1267_v18 = vshrl.u32 %v1262_v5, 16  ;;  %v1035_v52 = vadd.f32 0.041655596, %v1034_v54  ;;  %v1042_v47 = vadd.f32 0.008332121, %v1041_v9 }
 0x16a   :  { %v4289_v8 = vshrl.u32 %v849_v55, 30  ;;  %v1255_v43 = vsel %vm1247_vm10, %v1234_v22, %v4248_v50  ;;  %v1257_v61 = vsel %vm1249_vm2, %v4250_v24, %v1256_v44  ;;  %v1050_v29 = vand.u32 3, %v1049_v23 }
 0x16b   :  { %v1269_v27 = vmul.u32 %v1267_v18, %v4283_v49  ;;  %v4299_v3 = vmul.u32 %v1266_v46, %v4286_v6  ;;  %v1036_v59 = vmul.f32 %v1035_v52, %v1033_v37  ;;  %v1043_v11 = vmul.f32 %v1042_v47, %v1033_v37 }
 0x16c   :  { %v851_v35 = vshll.u32 %v4289_v8, 30  ;;  %v4305_v10 = vsel %vm1095_vm5, %v4257_v56, 920167782  ;;  %v5283_v62 = vor.u32 %v5281_v38, %v5282_v31  ;;  %v1268_v45 = vmul.u32 %v1266_v46, %v4283_v49 }
 0x16d   :  { %v1272_v4 = vshll.u32 %v1269_v27, 16  ;;  %v1037_v25 = vadd.f32 -0.4999988, %v1036_v59  ;;  %v1044_v44 = vadd.f32 -0.16666654, %v1043_v11  ;;  %v1258_v34 = vsel %vm1248_vm15, %v1255_v43, %v1257_v61 }
 0x16e   :  { %v4312_v40 = vsel %vm1095_vm5, %v5283_v62, 1326507024  ;;  %v4315_v23 = vsub.s32 %v848_v0, %v851_v35  ;;  %v1271_v54 = vmul.u32 %v1267_v18, %v4286_v6  ;;  %v1274_v9 = vshll.u32 %v4299_v3, 16 }
 0x16f   :  { %vm1276_vm3 = vc.u32 %v1268_v45, %v1272_v4  ;;  %v1278_v55 = vadd.s32 %v1272_v4, %v1268_v45  ;;  %v1038_v5 = vmul.f32 %v1037_v25, %v1033_v37  ;;  %v1045_v52 = vmul.f32 %v1044_v44, %v1033_v37 }
 0x170   :  { %vm1051_vm6 = vcmp.lt.s32.totalorder %v1050_v29, 2  ;;  %vm853_vm7 = vcmp.lt.s32.totalorder %v4315_v23, 0  ;;  %v854_v46 = vsub.s32 0, %v4315_v23  ;;  %vm1048_vm8 = vweird.f32 %v3257_v63 }
 0x171   :  { %v1277_v0 = vsel %vm1276_vm3, 1, %v5243_v16  ;;  %vm1280_vm9 = vc.u32 %v1278_v55, %v1274_v9  ;;  %v1288_v47 = vand.u32 65535, %v1258_v34  ;;  %v1289_v43 = vshrl.u32 %v1258_v34, 16 }
 0x172   :  { %v4325_v61 = vadd.f32 1.0, %v1038_v5  ;;  %v1046_v18 = vadd.f32 1.0, %v1045_v52  ;;  %v855_v59 = vsel %vm853_vm7, %v854_v46, %v4315_v23  ;;  %v1279_v11 = vadd.s32 %v1277_v0, %v1271_v54 }
 0x173   :  { %vm1052_vm14 = vcmp.eq.s32.totalorder %v1050_v29, 0  ;;  %v856_v37 = vclz %v855_v59  ;;  %v1231_v35 = vshrl.u32 %v5244_v13, %v5274_v2  ;;  %v1252_v38 = vsel %vm1250_vm11, %v4250_v24, 2102212464 }
 0x174   :  { %v4333_v31 = vmul.f32 %v1046_v18, %v1031_v12  ;;  %vm1055_vm0 = vcmp.eq.s32.totalorder %v1050_v29, 2  ;;  %v1056_v62 = vxor.u32 2147483648, %v4325_v61  ;;  %v1281_v45 = vsel %vm1280_vm9, 1, %v5243_v16 }
 0x175   :  { %v3134_v4 = vadd.s32 4294967294, %v856_v37  ;;  %v1251_v25 = vsel %vm1247_vm10, %v1231_v35, %v1234_v22  ;;  %v1283_v44 = vadd.s32 %v1281_v45, %v1279_v11  ;;  %v1291_v34 = vmul.u32 %v1289_v43, %v4283_v49 }
 0x176   :  { %v1053_v2 = vxor.u32 2147483648, %v4333_v31  ;;  %v1253_v24 = vsel %vm1249_vm2, %v4248_v50, %v1252_v38  ;;  %v1273_v12 = vshrl.u32 %v1269_v27, 16  ;;  %v1292_v54 = vmul.u32 %v1288_v47, %v4286_v6 }
 0x177   :  { %v1057_v9 = vsel %vm1055_vm0, %v1056_v62, %v4333_v31  ;;  %vm3135_vm11 = vcmp.lt.s32.totalorder %v3134_v4, 0  ;;  %v874_v55 = vsub.s32 4, %v4289_v8  ;;  %v1275_v22 = vshrl.u32 %v4299_v3, 16 }
 0x178   :  { %v1054_v5 = vsel %vm1052_vm14, %v4325_v61, %v1053_v2  ;;  %v859_v52 = vsel %vm3135_vm11, 0, %v3134_v4  ;;  %v1284_v46 = vadd.s32 %v1283_v44, %v1273_v12  ;;  %v1294_v50 = vshll.u32 %v1291_v34, 16 }
 0x179   :  { %v1058_v27 = vsel %vm1051_vm6, %v1054_v5, %v1057_v9  ;;  %v860_v0 = vsub.s32 32, %v859_v52  ;;  %v864_v18 = vsub.s32 4294967266, %v859_v52  ;;  %v1290_v59 = vmul.u32 %v1288_v47, %v4283_v49  ;;  %v5284_v47 = vld [vmem:[#allocation3_spill] sm:$0xff] }
 0x17a   :  { %v1059_v11 = vsel %vm1048_vm8, nan, %v1058_v27  ;;  %v861_v37 = vshll.u32 %v4315_v23, %v859_v52  ;;  %v1293_v3 = vmul.u32 %v1289_v43, %v4286_v6  ;;  %v1296_v35 = vshll.u32 %v1292_v54, 16 }
 0x17b   :  { %2701 = vxpose.xlu2.b32.cont [3/4] (short) %v1059_v11, 128  ;;  %vm752_vm1 = vcmp.lt.s32.totalorder %v5271_v33, 0  ;;  %v862_v38 = vshrl.u32 %v4220_v51, %v860_v0  ;;  %v865_v45 = vadd.s32 127, %v864_v18  ;;  %vm1298_vm13 = vc.u32 %v1290_v59, %v1294_v50 }
 0x17c   :  { %v1300_v29 = vadd.s32 %v1294_v50, %v1290_v59  ;;  %v1285_v4 = vadd.s32 %v1284_v46, %v1275_v22  ;;  %v1295_v44 = vshrl.u32 %v1291_v34, 16  ;;  %v1299_v49 = vsel %vm1298_vm13, 1, %v5243_v16 }
 0x17d   :  { %v1060_v12 = vand.u32 2147483647, %v5284_v47  ;;  %v863_v9 = vor.u32 %v862_v38, %v861_v37  ;;  %v866_v5 = vshll.u32 %v865_v45, 23  ;;  %v1301_v23 = vadd.s32 %v1299_v49, %v1293_v3 }
 0x17e   :  { %vm1302_vm2 = vc.u32 %v1300_v29, %v1296_v35  ;;  %v1297_v6 = vshrl.u32 %v1292_v54, 16  ;;  %v1304_v52 = vadd.s32 %v1300_v29, %v1296_v35  ;;  %v1077_v34 = vshll.u32 %v5244_v13, %v5275_v41 }
 0x17f   :  { %v1303_v43 = vsel %vm1302_vm2, 1, %v5243_v16  ;;  %v1067_v51 = vand.u32 8388607, %v1060_v12  ;;  %v867_v27 = vor.u32 4788187, %v866_v5  ;;  %v870_v0 = vcvt.s32.f32 %v863_v9 }
 0x180   :  { %v1305_v50 = vadd.s32 %v1303_v43, %v1301_v23  ;;  %v4369_v22 = vadd.s32 %v1304_v52, %v1285_v4  ;;  %vm1310_vm10 = vc.u32 %v1285_v4, %v1304_v52  ;;  %v1078_v18 = vshrl.u32 %v5245_v14, %v5276_v1 }
 0x181   :  { %v1068_v46 = vor.u32 8388608, %v1067_v51  ;;  %v868_v54 = vand.u32 2147483647, %v867_v27  ;;  %v1080_v11 = vshll.u32 %v5245_v14, %v5275_v41  ;;  %v1081_v37 = vshrl.u32 %v5246_v58, %v5276_v1 }
 0x182   :  { %v1306_v59 = vadd.s32 %v1305_v50, %v1295_v44  ;;  %vm4379_vm3 = vcmp.le.f32.partialorder %v750_v57, 0.7853982  ;;  %v4383_v35 = vor.u32 %v1078_v18, %v1077_v34  ;;  %v1083_v38 = vshll.u32 %v5246_v58, %v5275_v41 }
 0x183   :  { %v1084_v45 = vshrl.u32 %v5247_v15, %v5276_v1  ;;  %v871_v29 = vmul.f32 %v870_v0, %v868_v54  ;;  %v1254_v14 = vsel %vm1248_vm15, %v1251_v25, %v1253_v24  ;;  %v4391_v49 = vor.u32 %v1081_v37, %v1080_v11 }
 0x184   :  { %v1307_v44 = vadd.s32 %v1306_v59, %v1297_v6  ;;  %v875_v57 = vsel %vm752_vm1, %v874_v55, %v4289_v8  ;;  %vm1094_vm6 = vcmp.lt.s32.totalorder %v3996_v19, 3  ;;  %v4399_v5 = vshll.u32 %v1068_v46, 8 }
 0x185   :  { %v4396_v9 = vor.u32 %v1084_v45, %v1083_v38  ;;  %v872_v58 = vxor.u32 2147483648, %v871_v29  ;;  %vm1092_vm7 = vcmp.lt.s32.totalorder %v3996_v19, 1  ;;  %v1106_v15 = vsel %vm1094_vm6, %v4257_v56, %v4312_v40 }
 0x186   :  { %v1311_v41 = vadd.s32 1, %v1307_v44  ;;  %v1308_v39 = vmul.u32 %v4268_v36, %v1254_v14  ;;  %v1100_v8 = vsel %vm1092_vm7, %v4383_v35, %v4391_v49  ;;  %v877_v36 = vsel %vm4379_vm3, 0, %v875_v57 }
 0x187   :  { %v1102_v25 = vsel %vm1094_vm6, %v4396_v9, %v4305_v10  ;;  %v1104_v24 = vsel %vm1092_vm7, %v4391_v49, %v4396_v9  ;;  %v873_v56 = vsel %vm752_vm1, %v872_v58, %v871_v29  ;;  %vm1093_vm15 = vcmp.lt.s32.totalorder %v3996_v19, 2 }
 0x188   :  { %v1312_v40 = vsel %vm1310_vm10, %v1311_v41, %v1307_v44  ;;  %v876_v55 = vsel %vm4379_vm3, %v5271_v33, %v873_v56  ;;  %v1107_v23 = vsel %vm1093_vm15, %v1104_v24, %v1106_v15  ;;  %v1109_v6 = vand.u32 65535, %v4399_v5 }
 0x189   :  { %v1313_v10 = vadd.s32 %v1312_v40, %v1308_v39  ;;  %v878_v43 = vmul.f32 %v876_v55, %v876_v55  ;;  %v4433_v51 = vsel %vm1093_vm15, %v1100_v8, %v1102_v25  ;;  %v1111_v27 = vand.u32 65535, %v1107_v23 }
 0x18a   :  { %v1112_v4 = vshrl.u32 %v1107_v23, 16  ;;  %v894_v52 = vadd.s32 3, %v877_v36  ;;  %v1110_v50 = vshrl.u32 %v4399_v5, 16  ;;  %v4436_v54 = vand.u32 3, %v877_v36 }
 0x18b   :  { %v1314_v0 = vadd.s32 536870912, %v1313_v10  ;;  %v879_v34 = vmul.f32 -0.001358992, %v878_v43  ;;  %v886_v46 = vmul.f32 -0.00019511016, %v878_v43  ;;  %v1134_v37 = vshrl.u32 %v4433_v51, 16 }
 0x18c   :  { %v1114_v18 = vmul.u32 %v1112_v4, %v1109_v6  ;;  %v1115_v11 = vmul.u32 %v1111_v27, %v1110_v50  ;;  %v1113_v45 = vmul.u32 %v1111_v27, %v1109_v6  ;;  %v895_v14 = vand.u32 3, %v894_v52 }
 0x18d   :  { %v4438_v59 = vshrl.u32 %v1314_v0, 30  ;;  %v880_v3 = vadd.f32 0.041655596, %v879_v34  ;;  %v887_v38 = vadd.f32 0.008332121, %v886_v46  ;;  %v1116_v57 = vmul.u32 %v1112_v4, %v1110_v50 }
 0x18e   :  { %v1117_v29 = vshll.u32 %v1114_v18, 16  ;;  %vm2135_vm14 = vcmp.eq.s32.totalorder %v4436_v54, 2  ;;  %v1119_v8 = vshll.u32 %v1115_v11, 16  ;;  %v4446_v40 = vmul.u32 %v1134_v37, %v1109_v6 }
 0x18f   :  { %v1316_v44 = vshll.u32 %v4438_v59, 30  ;;  %v881_v58 = vmul.f32 %v880_v3, %v878_v43  ;;  %v888_v41 = vmul.f32 %v887_v38, %v878_v43  ;;  %vm2132_vm0 = vcmp.eq.s32.totalorder %v4436_v54, 0 }
 0x190   :  { %vm1121_vm9 = vc.u32 %v1113_v45, %v1117_v29  ;;  %v1123_v15 = vadd.s32 %v1117_v29, %v1113_v45  ;;  %v1133_v27 = vand.u32 65535, %v4433_v51  ;;  %vm2131_vm13 = vcmp.lt.s32.totalorder %v4436_v54, 2 }
 0x191   :  { %v4443_v39 = vsub.s32 %v1313_v10, %v1316_v44  ;;  %v1122_v25 = vsel %vm1121_vm9, 1, %v5243_v16  ;;  %v882_v24 = vadd.f32 -0.4999988, %v881_v58  ;;  %v889_v56 = vadd.f32 -0.16666654, %v888_v41 }
 0x192   :  { %v1124_v36 = vadd.s32 %v1122_v25, %v1116_v57  ;;  %vm1125_vm1 = vc.u32 %v1123_v15, %v1119_v8  ;;  %vm896_vm2 = vcmp.lt.s32.totalorder %v895_v14, 2  ;;  %vm897_vm10 = vcmp.eq.s32.totalorder %v895_v14, 0 }
 0x193   :  { %vm1318_vm11 = vcmp.lt.s32.totalorder %v4443_v39, 0  ;;  %v1319_v23 = vsub.s32 0, %v4443_v39  ;;  %v883_v4 = vmul.f32 %v882_v24, %v878_v43  ;;  %v890_v10 = vmul.f32 %v889_v56, %v878_v43 }
 0x194   :  { %v1126_v52 = vsel %vm1125_vm1, 1, %v5243_v16  ;;  %vm893_vm3 = vweird.f32 %v5271_v33  ;;  %vm900_vm9 = vcmp.eq.s32.totalorder %v895_v14, 2  ;;  %v1118_v34 = vshrl.u32 %v1114_v18, 16 }
 0x195   :  { %v1320_v0 = vsel %vm1318_vm11, %v1319_v23, %v4443_v39  ;;  %v1128_v46 = vadd.s32 %v1126_v52, %v1124_v36  ;;  %v884_v3 = vadd.f32 1.0, %v883_v4  ;;  %v891_v38 = vadd.f32 1.0, %v890_v10 }
 0x196   :  { %v1321_v45 = vclz %v1320_v0  ;;  %v1139_v51 = vshll.u32 %v4446_v40, 16  ;;  %v1120_v29 = vshrl.u32 %v1115_v11, 16  ;;  %v1135_v44 = vmul.u32 %v1133_v27, %v1109_v6 }
 0x197   :  { %v1129_v43 = vadd.s32 %v1128_v46, %v1118_v34  ;;  %v1137_v57 = vmul.u32 %v1133_v27, %v1110_v50  ;;  %v892_v58 = vmul.f32 %v891_v38, %v876_v55  ;;  %v901_v41 = vxor.u32 2147483648, %v884_v3 }
 0x198   :  { %v3143_v15 = vadd.s32 4294967294, %v1321_v45  ;;  %v1076_v8 = vshrl.u32 %v5244_v13, %v5276_v1  ;;  %v1097_v18 = vsel %vm1095_vm5, %v4396_v9, 2102212464  ;;  %v1138_v24 = vmul.u32 %v1134_v37, %v1110_v50 }
 0x199   :  { %v1130_v25 = vadd.s32 %v1129_v43, %v1120_v29  ;;  %vm1143_vm11 = vc.u32 %v1135_v44, %v1139_v51  ;;  %v898_v56 = vxor.u32 2147483648, %v892_v58  ;;  %v2137_v11 = vsel %vm2135_vm14, %v901_v41, %v892_v58 }
 0x19a   :  { %v902_v6 = vsel %vm900_vm9, %v901_v41, %v892_v58  ;;  %vm3144_vm1 = vcmp.lt.s32.totalorder %v3143_v15, 0  ;;  %v1141_v36 = vshll.u32 %v1137_v57, 16  ;;  %v1144_v23 = vsel %vm1143_vm11, 1, %v5243_v16 }
 0x19b   :  { %v1324_v55 = vsel %vm3144_vm1, 0, %v3143_v15  ;;  %v1145_v27 = vadd.s32 %v1139_v51, %v1135_v44  ;;  %v2134_v13 = vsel %vm2132_vm0, %v884_v3, %v898_v56  ;;  %v899_v1 = vsel %vm897_vm10, %v884_v3, %v898_v56 }
 0x19c   :  { %v1325_v9 = vsub.s32 32, %v1324_v55  ;;  %v1326_v50 = vshll.u32 %v4443_v39, %v1324_v55  ;;  %v2138_v37 = vsel %vm2131_vm13, %v2134_v13, %v2137_v11  ;;  %v903_v4 = vsel %vm896_vm2, %v899_v1, %v902_v6 }
 0x19d   :  { %v1329_v10 = vsub.s32 4294967266, %v1324_v55  ;;  %v1146_v52 = vadd.s32 %v1144_v23, %v1138_v24  ;;  %v2139_v0 = vsel %vm893_vm3, nan, %v2138_v37  ;;  %v904_v34 = vsel %vm893_vm3, nan, %v903_v4 }
 0x19e   :  { %v1327_v46 = vshrl.u32 %v4369_v22, %v1325_v9  ;;  %vm1147_vm5 = vc.u32 %v1145_v27, %v1141_v36  ;;  %2894 = vxpose.xlu0.b32.cont [3/4] (short) %v2139_v0, 128  ;;  %2669 = vxpose.xlu1.b32.cont [3/4] (short) %v904_v34, 128  ;;  %v1149_v54 = vadd.s32 %v1145_v27, %v1141_v36  ;;  %v1140_v45 = vshrl.u32 %v4446_v40, 16 }
 0x19f   :  { %v1330_v3 = vadd.s32 127, %v1329_v10  ;;  %v1148_v39 = vsel %vm1147_vm5, 1, %v5243_v16  ;;  %v1096_v14 = vsel %vm1092_vm7, %v1076_v8, %v4383_v35  ;;  %v1098_v33 = vsel %vm1094_vm6, %v4391_v49, %v1097_v18 }
 0x1a0   :  { %v1328_v38 = vor.u32 %v1327_v46, %v1326_v50  ;;  %v1150_v51 = vadd.s32 %v1148_v39, %v1146_v52  ;;  %v1154_v22 = vadd.s32 %v1149_v54, %v1130_v25  ;;  %vm1155_vm14 = vc.u32 %v1130_v25, %v1149_v54 }
 0x1a1   :  { %v1331_v29 = vshll.u32 %v1330_v3, 23  ;;  %v1142_v43 = vshrl.u32 %v1137_v57, 16  ;;  %v1099_v16 = vsel %vm1093_vm15, %v1096_v14, %v1098_v33  ;;  %vm1217_vm6 = vcmp.lt.s32.totalorder %v5277_v60, 0 }
 0x1a2   :  { %v1151_v44 = vadd.s32 %v1150_v51, %v1140_v45  ;;  %v1335_v24 = vcvt.s32.f32 %v1328_v38  ;;  %v1153_v40 = vmul.u32 %v4399_v5, %v1099_v16  ;;  %v1339_v49 = vsub.s32 4, %v4438_v59 }
 0x1a3   :  { %v1332_v58 = vor.u32 4788187, %v1331_v29  ;;  %vm1216_vm7 = vcmp.le.f32.partialorder %v1215_v42, 0.7853982  ;;  %vm1358_vm3 = vweird.f32 %v5277_v60  ;;  %vm1062_vm9 = vcmp.lt.s32.totalorder %v5284_v47, 0 }
 0x1a4   :  { %v1152_v41 = vadd.s32 %v1151_v44, %v1142_v43  ;;  %v1340_v36 = vsel %vm1217_vm6, %v1339_v49, %v4438_v59  ;;  %vm1061_vm11 = vcmp.le.f32.partialorder %v1060_v12, 0.7853982 }
 0x1a5   :  { %v1333_v15 = vand.u32 2147483647, %v1332_v58  ;;  %v1342_v13 = vsel %vm1216_vm7, 0, %v1340_v36 }
 0x1a6   :  { %v1156_v35 = vadd.s32 1, %v1152_v41  ;;  %v1359_v42 = vadd.s32 3, %v1342_v13 }
 0x1a7   :  { %v1336_v8 = vmul.f32 %v1335_v24, %v1333_v15 }
 0x1a8   :  { %v1157_v56 = vsel %vm1155_vm14, %v1156_v35, %v1152_v41  ;;  %v1360_v54 = vand.u32 3, %v1359_v42 }
 0x1a9   :  { %v1337_v11 = vxor.u32 2147483648, %v1336_v8  ;;  %v1158_v6 = vadd.s32 %v1157_v56, %v1153_v40 }
 0x1aa   :  { %vm1365_vm13 = vcmp.eq.s32.totalorder %v1360_v54, 2  ;;  %vm1362_vm2 = vcmp.eq.s32.totalorder %v1360_v54, 0  ;;  %vm1361_vm10 = vcmp.lt.s32.totalorder %v1360_v54, 2 }
 0x1ab   :  { %v1338_v57 = vsel %vm1217_vm6, %v1337_v11, %v1336_v8  ;;  %v1159_v19 = vadd.s32 536870912, %v1158_v6 }
 0x1ac   :  { %v1341_v18 = vsel %vm1216_vm7, %v5277_v60, %v1338_v57  ;;  %v1668_v60 = vand.u32 3, %v3653_v32  ;;  %v5288_v32 = vxor.u32 2147483648, %v4037_v20 }
 0x1ad   :  { %v1343_v25 = vmul.f32 %v1341_v18, %v1341_v18  ;;  %v1160_v55 = vshrl.u32 %v1159_v19, 30 }
 0x1af   :  { %v1344_v23 = vmul.f32 -0.001358992, %v1343_v25  ;;  %v1351_v5 = vmul.f32 -0.00019511016, %v1343_v25  ;;  %v1161_v27 = vshll.u32 %v1160_v55, 30 }
 0x1b1   :  { %v1345_v1 = vadd.f32 0.041655596, %v1344_v23  ;;  %v1352_v9 = vadd.f32 0.008332121, %v1351_v5  ;;  %v1162_v50 = vsub.s32 %v1158_v6, %v1161_v27 }
 0x1b3   :  { %v1346_v37 = vmul.f32 %v1345_v1, %v1343_v25  ;;  %v1353_v4 = vmul.f32 %v1352_v9, %v1343_v25  ;;  %vm1163_vm15 = vcmp.lt.s32.totalorder %v1162_v50, 0  ;;  %v1164_v10 = vsub.s32 0, %v1162_v50 }
 0x1b5   :  { %v1347_v52 = vadd.f32 -0.4999988, %v1346_v37  ;;  %v1354_v0 = vadd.f32 -0.16666654, %v1353_v4  ;;  %v1165_v34 = vsel %vm1163_vm15, %v1164_v10, %v1162_v50  ;;  %v2592_v37 = vand.u32 3, %v1342_v13 }
 0x1b6   :  { %v1166_v46 = vclz %v1165_v34 }
 0x1b7   :  { %v1348_v3 = vmul.f32 %v1347_v52, %v1343_v25  ;;  %v1355_v39 = vmul.f32 %v1354_v0, %v1343_v25  ;;  %vm2597_vm1 = vcmp.eq.s32.totalorder %v2592_v37, 2  ;;  %vm2594_vm5 = vcmp.eq.s32.totalorder %v2592_v37, 0 }
 0x1b8   :  { %v3140_v59 = vadd.s32 4294967294, %v1166_v46  ;;  %vm2593_vm14 = vcmp.lt.s32.totalorder %v2592_v37, 2 }
 0x1b9   :  { %v1349_v38 = vadd.f32 1.0, %v1348_v3  ;;  %v1356_v14 = vadd.f32 1.0, %v1355_v39 }
 0x1ba   :  { %vm3141_vm0 = vcmp.lt.s32.totalorder %v3140_v59, 0 }
 0x1bb   :  { %v1357_v45 = vmul.f32 %v1356_v14, %v1341_v18  ;;  %v1366_v51 = vxor.u32 2147483648, %v1349_v38  ;;  %v1169_v29 = vsel %vm3141_vm0, 0, %v3140_v59 }
 0x1bc   :  { %v1170_v33 = vsub.s32 32, %v1169_v29  ;;  %v1174_v43 = vsub.s32 4294967266, %v1169_v29  ;;  %v1171_v16 = vshll.u32 %v1162_v50, %v1169_v29 }
 0x1bd   :  { %v1363_v44 = vxor.u32 2147483648, %v1357_v45  ;;  %v1367_v58 = vsel %vm1365_vm13, %v1366_v51, %v1357_v45  ;;  %v2599_v12 = vsel %vm2597_vm1, %v1366_v51, %v1357_v45 }
 0x1be   :  { %v1172_v41 = vshrl.u32 %v1154_v22, %v1170_v33  ;;  %v1175_v15 = vadd.s32 127, %v1174_v43  ;;  %v1184_v22 = vsub.s32 4, %v1160_v55 }
 0x1bf   :  { %v1364_v24 = vsel %vm1362_vm2, %v1349_v38, %v1363_v44  ;;  %v2596_v59 = vsel %vm2594_vm5, %v1349_v38, %v1363_v44 }
 0x1c0   :  { %v1368_v35 = vsel %vm1361_vm10, %v1364_v24, %v1367_v58  ;;  %v1173_v8 = vor.u32 %v1172_v41, %v1171_v16  ;;  %v1176_v40 = vshll.u32 %v1175_v15, 23  ;;  %v1185_v23 = vsel %vm1062_vm9, %v1184_v22, %v1160_v55 }
 0x1c1   :  { %v1369_v56 = vsel %vm1358_vm3, nan, %v1368_v35  ;;  %v1187_v1 = vsel %vm1061_vm11, 0, %v1185_v23  ;;  %v2600_v14 = vsel %vm2593_vm14, %v2596_v59, %v2599_v12  ;;  %vm1203_vm10 = vweird.f32 %v5284_v47 }
 0x1c2   :  { %2702 = vxpose.xlu2.b32.end [4/4] (short) %v1369_v56, 128  ;;  %v1177_v11 = vor.u32 4788187, %v1176_v40  ;;  %v1180_v49 = vcvt.s32.f32 %v1173_v8  ;;  %v1204_v42 = vadd.s32 3, %v1187_v1  ;;  %v2438_v3 = vand.u32 3, %v1187_v1 }
 0x1c3   :  { %v2601_v13 = vsel %vm1358_vm3, nan, %v2600_v14  ;;  %vm1670_vm3 = vcmp.eq.s32.totalorder %v1668_v60, 0  ;;  %v5287_v35 = vxor.u32 2147483648, %v3738_v26  ;;  %v1976_v40 = vand.u32 3, %v3932_v7 }
 0x1c4   :  { %v1178_v6 = vand.u32 2147483647, %v1177_v11  ;;  %v1205_v39 = vand.u32 3, %v1204_v42  ;;  %vm2443_vm6 = vcmp.eq.s32.totalorder %v2438_v3, 2  ;;  %vm2440_vm15 = vcmp.eq.s32.totalorder %v2438_v3, 0 }
 0x1c5   :  { %vm2439_vm13 = vcmp.lt.s32.totalorder %v2438_v3, 2  ;;  %v1672_v24 = vsel %vm1670_vm3, %v3738_v26, %v433_v48  ;;  %vm1978_vm1 = vcmp.eq.s32.totalorder %v1976_v40, 0  ;;  %vm1981_vm5 = vcmp.eq.s32.totalorder %v1976_v40, 2 }
 0x1c6   :  { %v1181_v57 = vmul.f32 %v1180_v49, %v1178_v6  ;;  %vm1210_vm7 = vcmp.eq.s32.totalorder %v1205_v39, 2  ;;  %vm1207_vm0 = vcmp.eq.s32.totalorder %v1205_v39, 0  ;;  %vm1206_vm2 = vcmp.lt.s32.totalorder %v1205_v39, 2 }
 0x1c7   :  { %v1980_v11 = vsel %vm1978_vm1, %v4028_v28, %v5288_v32  ;;  %vm1977_vm14 = vcmp.lt.s32.totalorder %v1976_v40, 2  ;;  %v5289_v48 = vxor.u32 2147483648, %v4028_v28 }
 0x1c8   :  { %v1182_v19 = vxor.u32 2147483648, %v1181_v57 }
 0x1c9   :  { %v1983_v6 = vsel %vm1981_vm5, %v5289_v48, %v4037_v20  ;;  %v2618_v48 = vld [vmem:[%s5177_s0 + $0x80] sm:$0xff] }
 0x1ca   :  { %v1183_v18 = vsel %vm1062_vm9, %v1182_v19, %v1181_v57  ;;  %vm1673_vm9 = vcmp.eq.s32.totalorder %v1668_v60, 2  ;;  %v1984_v26 = vsel %vm1977_vm14, %v1980_v11, %v1983_v6 }
 0x1cb   :  { %v1186_v25 = vsel %vm1061_vm11, %v5284_v47, %v1183_v18  ;;  %vm1669_vm11 = vcmp.lt.s32.totalorder %v1668_v60, 2  ;;  %v1675_v8 = vsel %vm1673_vm9, %v5287_v35, %v3743_v53  ;;  %v2284_v53 = vand.u32 3, %v4261_v21 }
 0x1cc   :  { %v1188_v36 = vmul.f32 %v1186_v25, %v1186_v25  ;;  %v1676_v47 = vsel %vm1669_vm11, %v1672_v24, %v1675_v8  ;;  %v1985_v7 = vsel %vm738_vm4, nan, %v1984_v26  ;;  %vm2634_vm4 = vcmask 23552  }
 0x1cd   :  { %v1677_v56 = vsel %vm428_vm12, nan, %v1676_v47  ;;  %vm2286_vm12 = vcmp.eq.s32.totalorder %v2284_v53, 0  ;;  %2651 = vst.msk [vmem:[%s5178_s3 + $0x80] sm:$0xff] %vm2634_vm4, %v2618_v48 }
 0x1ce   :  { %v1189_v5 = vmul.f32 -0.001358992, %v1188_v36  ;;  %v1196_v27 = vmul.f32 -0.00019511016, %v1188_v36  ;;  %v2288_v30 = vsel %vm2286_vm12, %v4325_v61, %v1053_v2 }
 0x1d0   :  { %v1190_v9 = vadd.f32 0.041655596, %v1189_v5  ;;  %v1197_v50 = vadd.f32 0.008332121, %v1196_v27 }
 0x1d2   :  { %v1191_v4 = vmul.f32 %v1190_v9, %v1188_v36  ;;  %v1198_v10 = vmul.f32 %v1197_v50, %v1188_v36 }
 0x1d4   :  { %v1192_v52 = vadd.f32 -0.4999988, %v1191_v4  ;;  %v1199_v0 = vadd.f32 -0.16666654, %v1198_v10 }
 0x1d6   :  { %v1193_v34 = vmul.f32 %v1192_v52, %v1188_v36  ;;  %v1200_v46 = vmul.f32 %v1199_v0, %v1188_v36 }
 0x1d8   :  { %v1194_v54 = vadd.f32 1.0, %v1193_v34  ;;  %v1201_v55 = vadd.f32 1.0, %v1200_v46 }
 0x1da   :  { %v1202_v29 = vmul.f32 %v1201_v55, %v1186_v25  ;;  %v1211_v33 = vxor.u32 2147483648, %v1194_v54 }
 0x1dc   :  { %v1208_v43 = vxor.u32 2147483648, %v1202_v29  ;;  %v2445_v58 = vsel %vm2443_vm6, %v1211_v33, %v1202_v29  ;;  %v1212_v16 = vsel %vm1210_vm7, %v1211_v33, %v1202_v29  ;;  %vm2289_vm6 = vcmp.eq.s32.totalorder %v2284_v53, 2 }
 0x1dd   :  { %vm2285_vm7 = vcmp.lt.s32.totalorder %v2284_v53, 2  ;;  %v2291_v49 = vsel %vm2289_vm6, %v1056_v62, %v4333_v31  ;;  %v2603_v53 = vld [vmem:[%s5177_s0 + $0x8] sm:$0xff] }
 0x1de   :  { %v2442_v45 = vsel %vm2440_vm15, %v1194_v54, %v1208_v43  ;;  %v1209_v51 = vsel %vm1207_vm0, %v1194_v54, %v1208_v43  ;;  %v2292_v28 = vsel %vm2285_vm7, %v2288_v30, %v2291_v49  ;;  %2636 = vst.msk [vmem:[%s5178_s3 + $0x8] sm:$0xff] %vm2634_vm4, %v2603_v53  ;;  %vm3084_vm15 = vcmask 548120  }
 0x1df   :  { %v2446_v38 = vsel %vm2439_vm13, %v2442_v45, %v2445_v58  ;;  %v1213_v44 = vsel %vm1206_vm2, %v1209_v51, %v1212_v16  ;;  %v2293_v20 = vsel %vm1048_vm8, nan, %v2292_v28  ;;  %v2608_v45 = vld [vmem:[%s5177_s0 + $0x30] sm:$0xff]  ;;  %vm2859_vm8 = vcmask 285720   ;;  %v2619_v28 = vld [vmem:[%s5177_s0 + $0x88] sm:$0xff] }
 0x1e0   :  { %v2447_v41 = vsel %vm1203_vm10, nan, %v2446_v38  ;;  %v1214_v15 = vsel %vm1203_vm10, nan, %v1213_v44  ;;  %2641 = vst.msk [vmem:[%s5178_s3 + $0x30] sm:$0xff] %vm2634_vm4, %v2608_v45 }
 0x1e1   :  { %2895 = vxpose.xlu0.b32.end [4/4] (short) %v2447_v41, 128  ;;  %2670 = vxpose.xlu1.b32.end [4/4] (short) %v1214_v15, 128  ;;  %2652 = vst.msk [vmem:[%s5178_s3 + $0x88] sm:$0xff] %vm2634_vm4, %v2619_v28 }
 0x243   :  { %v2715_v21 = vpop.trf.xlu2 }
 0x249   :  { %2924 = vxpose.xlu1.b32.start [1/4] (short) %v1677_v56, 128  ;;  %v2602_v56 = vld [vmem:[%s5177_s0] sm:$0xff] }
 0x24a   :  { %2635 = vst.msk [vmem:[%s5178_s3] sm:$0xff] %vm2634_vm4, %v2602_v56 }
 0x24b   :  { %v2716_v17 = vpop.trf.xlu2 }
 0x251   :  { %2925 = vxpose.xlu1.b32.cont [2/4] (short) %v1985_v7, 128 }
 0x253   :  { %v2717_v57 = vpop.trf.xlu2 }
 0x259   :  { %2926 = vxpose.xlu1.b32.cont [3/4] (short) %v2293_v20, 128 }
 0x25b   :  { %v2718_v18 = vpop.trf.xlu2 }
 0x261   :  { %2927 = vxpose.xlu1.b32.end [4/4] (short) %v2601_v13, 128 }
 0x263   :  { %v4532_v36 = vpop.trf.xlu2 }
 0x26b   :  { %v4534_v61 = vpop.trf.xlu2 }
 0x26d   :  { %v2683_v19 = vpop.trf.xlu1  ;;  %v2908_v25 = vpop.trf.xlu0 }
 0x273   :  { %v4536_v63 = vpop.trf.xlu2 }
 0x275   :  { %v2684_v22 = vpop.trf.xlu1  ;;  %v2909_v5 = vpop.trf.xlu0 }
 0x27b   :  { %v4541_v50 = vpop.trf.xlu2 }
 0x27d   :  { %v2685_v2 = vpop.trf.xlu1  ;;  %v2910_v62 = vpop.trf.xlu0 }
 0x283   :  { %v4546_v10 = vpop.trf.xlu2 }
 0x285   :  { %v2686_v23 = vpop.trf.xlu1  ;;  %v2911_v1 = vpop.trf.xlu0 }
 0x28b   :  { %v4552_v0 = vpop.trf.xlu2 }
 0x28d   :  { %v2687_v31 = vpop.trf.xlu1  ;;  %v2912_v37 = vpop.trf.xlu0 }
 0x293   :  { %v4558_v12 = vpop.trf.xlu2 }
 0x295   :  { %v4538_v27 = vpop.trf.xlu1  ;;  %v2913_v42 = vpop.trf.xlu0 }
 0x29b   :  { %v4569_v55 = vpop.trf.xlu2 }
 0x29d   :  { %v2689_v9 = vpop.trf.xlu1  ;;  %v2914_v34 = vpop.trf.xlu0 }
 0x29e   :  { %2775 = vrot.lane.b32.xlu2 %v2689_v9, %s3198_s1  ;;  %v2606_v9 = vld [vmem:[%s5177_s0 + $0x20] sm:$0xff] }
 0x29f   :  { %2639 = vst.msk [vmem:[%s5178_s3 + $0x20] sm:$0xff] %vm2634_vm4, %v2606_v9 }
 0x2a3   :  { %v4576_v29 = vpop.trf.xlu2 }
 0x2a5   :  { %v4543_v4 = vpop.trf.xlu1  ;;  %v4560_v3 = vpop.trf.xlu0 }
 0x2a6   :  { %2988 = vrot.lane.b32.xlu2 %v2908_v25, %s3199_s2  ;;  %v2620_v25 = vld [vmem:[%s5177_s0 + $0x90] sm:$0xff] }
 0x2a7   :  { %2653 = vst.msk [vmem:[%s5178_s3 + $0x90] sm:$0xff] %vm2634_vm4, %v2620_v25 }
 0x2ab   :  { %v4582_v43 = vpop.trf.xlu2 }
 0x2ad   :  { %v4548_v52 = vpop.trf.xlu1  ;;  %v2916_v59 = vpop.trf.xlu0 }
 0x2ae   :  { %2990 = vrot.lane.b32.xlu2 %v2909_v5, %s3199_s2 }
 0x2af   :  { %2763 = vrot.lane.b32.xlu0 %v2683_v19, %s3198_s1 }
 0x2b3   :  { %v4595_v51 = vpop.trf.xlu2 }
 0x2b5   :  { %v4554_v46 = vpop.trf.xlu1  ;;  %v2917_v33 = vpop.trf.xlu0 }
 0x2b6   :  { %2992 = vrot.lane.b32.xlu2 %v2910_v62, %s3199_s2  ;;  %v2621_v62 = vld [vmem:[%s5177_s0 + $0x98] sm:$0xff] }
 0x2b7   :  { %2795 = vrot.lane.b32.xlu0 %v2715_v21, %s3198_s1  ;;  %2654 = vst.msk [vmem:[%s5178_s3 + $0x98] sm:$0xff] %vm2634_vm4, %v2621_v62 }
 0x2bb   :  { %v4602_v15 = vpop.trf.xlu2 }
 0x2bd   :  { %v4562_v39 = vpop.trf.xlu1  ;;  %v2918_v58 = vpop.trf.xlu0 }
 0x2be   :  { %2994 = vrot.lane.b32.xlu2 %v2911_v1, %s3199_s2 }
 0x2bf   :  { %2765 = vrot.lane.b32.xlu0 %v2684_v22, %s3198_s1 }
 0x2c5   :  { %v4566_v54 = vpop.trf.xlu1  ;;  %v2919_v38 = vpop.trf.xlu0 }
 0x2c6   :  { %2996 = vrot.lane.b32.xlu2 %v2912_v37, %s3199_s2 }
 0x2c7   :  { %2797 = vrot.lane.b32.xlu0 %v2716_v17, %s3198_s1 }
 0x2cd   :  { %v4572_v14 = vpop.trf.xlu1  ;;  %v2920_v60 = vpop.trf.xlu0 }
 0x2ce   :  { %2998 = vrot.lane.b32.xlu2 %v2913_v42, %s3199_s2 }
 0x2cf   :  { %2767 = vrot.lane.b32.xlu0 %v2685_v2, %s3198_s1 }
 0x2d5   :  { %v4578_v13 = vpop.trf.xlu1  ;;  %v2921_v8 = vpop.trf.xlu0 }
 0x2d6   :  { %3000 = vrot.lane.b32.xlu2 %v2914_v34, %s3199_s2  ;;  %v2607_v34 = vld [vmem:[%s5177_s0 + $0x28] sm:$0xff] }
 0x2d7   :  { %2799 = vrot.lane.b32.xlu0 %v2717_v57, %s3198_s1  ;;  %v2604_v57 = vld [vmem:[%s5177_s0 + $0x10] sm:$0xff]  ;;  %2640 = vst.msk [vmem:[%s5178_s3 + $0x28] sm:$0xff] %vm2634_vm4, %v2607_v34 }
 0x2d8   :  { %2637 = vst.msk [vmem:[%s5178_s3 + $0x10] sm:$0xff] %vm2634_vm4, %v2604_v57  ;;  %v2614_v57 = vld [vmem:[%s5177_s0 + $0x60] sm:$0xff] }
 0x2d9   :  { %2647 = vst.msk [vmem:[%s5178_s3 + $0x60] sm:$0xff] %vm2634_vm4, %v2614_v57 }
 0x2dd   :  { %v4584_v16 = vpop.trf.xlu1  ;;  %v2922_v32 = vpop.trf.xlu0 }
 0x2de   :  { %3004 = vrot.lane.b32.xlu2 %v2916_v59, %s3199_s2 }
 0x2df   :  { %2769 = vrot.lane.b32.xlu0 %v2686_v23, %s3198_s1  ;;  %v2605_v23 = vld [vmem:[%s5177_s0 + $0x18] sm:$0xff] }
 0x2e0   :  { %2638 = vst.msk [vmem:[%s5178_s3 + $0x18] sm:$0xff] %vm2634_vm4, %v2605_v23 }
 0x2e5   :  { %v4597_v44 = vpop.trf.xlu1  ;;  %v2923_v7 = vpop.trf.xlu0 }
 0x2e6   :  { %3006 = vrot.lane.b32.xlu2 %v2917_v33, %s3199_s2  ;;  %v2624_v33 = vld [vmem:[%s5177_s0 + $0xb0] sm:$0xff] }
 0x2e7   :  { %2801 = vrot.lane.b32.xlu0 %v2718_v18, %s3198_s1  ;;  %2657 = vst.msk [vmem:[%s5178_s3 + $0xb0] sm:$0xff] %vm2634_vm4, %v2624_v33 }
 0x2ed   :  { %v2940_v41 = vpop.trf.xlu1 }
 0x2ee   :  { %3008 = vrot.lane.b32.xlu2 %v2918_v58, %s3199_s2 }
 0x2ef   :  { %2771 = vrot.lane.b32.xlu0 %v2687_v31, %s3198_s1 }
 0x2f5   :  { %v2941_v24 = vpop.trf.xlu1 }
 0x2f6   :  { %3012 = vrot.lane.b32.xlu2 %v2920_v60, %s3199_s2 }
 0x2f7   :  { %2803 = vrot.lane.b32.xlu0 %v4532_v36, %s3198_s1 }
 0x2f8   :  { %v2776_v35 = vpop.permute.xlu2 %2775 }
 0x2f9   :  { %2866 = vst.msk [vmem:[%s5178_s3 + $0x30] sm:$0xff] %vm2859_vm8, %v2776_v35 }
 0x2fd   :  { %v2942_v40 = vpop.trf.xlu1 }
 0x2fe   :  { %3014 = vrot.lane.b32.xlu2 %v2921_v8, %s3199_s2  ;;  %v2610_v8 = vld [vmem:[%s5177_s0 + $0x40] sm:$0xff] }
 0x2ff   :  { %2773 = vrot.lane.b32.xlu0 %v4538_v27, %s3198_s1  ;;  %2643 = vst.msk [vmem:[%s5178_s3 + $0x40] sm:$0xff] %vm2634_vm4, %v2610_v8 }
 0x300   :  { %v2989_v47 = vpop.permute.xlu2 %2988 }
 0x305   :  { %v2943_v6 = vpop.trf.xlu1 }
 0x306   :  { %3016 = vrot.lane.b32.xlu2 %v2922_v32, %s3199_s2 }
 0x307   :  { %2805 = vrot.lane.b32.xlu0 %v4534_v61, %s3198_s1 }
 0x308   :  { %v2991_v11 = vpop.permute.xlu2 %2990 }
 0x30d   :  { %v2944_v30 = vpop.trf.xlu1 }
 0x30e   :  { %3020 = vrot.lane.b32.xlu2 %v2940_v41, %s3199_s2 }
 0x30f   :  { %2807 = vrot.lane.b32.xlu0 %v4536_v63, %s3198_s1 }
 0x310   :  { %v2993_v26 = vpop.permute.xlu2 %2992 }
 0x315   :  { %v2945_v20 = vpop.trf.xlu1 }
 0x316   :  { %3018 = vrot.lane.b32.xlu2 %v2923_v7, %s3199_s2  ;;  %v2628_v7 = vld [vmem:[%s5177_s0 + $0xd0] sm:$0xff] }
 0x317   :  { %2777 = vrot.lane.b32.xlu0 %v4543_v4, %s3198_s1  ;;  %2661 = vst.msk [vmem:[%s5178_s3 + $0xd0] sm:$0xff] %vm2634_vm4, %v2628_v7 }
 0x318   :  { %v4645_v49 = vpop.permute.xlu2 %2994 }
 0x31b   :  { %2781 = vrot.lane.b32.xlu1 %v4554_v46, %s3198_s1 }
 0x31d   :  { %v2946_v18 = vpop.trf.xlu1 }
 0x31e   :  { %3022 = vrot.lane.b32.xlu2 %v2941_v24, %s3199_s2  ;;  %v2625_v24 = vld [vmem:[%s5177_s0 + $0xb8] sm:$0xff] }
 0x31f   :  { %2809 = vrot.lane.b32.xlu0 %v4541_v50, %s3198_s1  ;;  %2658 = vst.msk [vmem:[%s5178_s3 + $0xb8] sm:$0xff] %vm2634_vm4, %v2625_v24 }
 0x320   :  { %v4659_v21 = vpop.permute.xlu2 %2996 }
 0x321   :  { %v2764_v17 = vpop.permute.xlu0 %2763 }
 0x322   :  { %2860 = vst.msk [vmem:[%s5178_s3] sm:$0xff] %vm2859_vm8, %v2764_v17 }
 0x323   :  { %3085 = vst.msk [vmem:[%s5178_s3] sm:$0xff] %vm3084_vm15, %v2989_v47  ;;  %3010 = vrot.lane.b32.xlu1 %v2919_v38, %s3199_s2  ;;  %v2609_v38 = vld [vmem:[%s5177_s0 + $0x38] sm:$0xff] }
 0x324   :  { %2642 = vst.msk [vmem:[%s5178_s3 + $0x38] sm:$0xff] %vm2634_vm4, %v2609_v38 }
 0x325   :  { %v2947_v5 = vpop.trf.xlu1 }
 0x326   :  { %3024 = vrot.lane.b32.xlu2 %v2942_v40, %s3199_s2  ;;  %v2626_v40 = vld [vmem:[%s5177_s0 + $0xc0] sm:$0xff] }
 0x327   :  { %2779 = vrot.lane.b32.xlu0 %v4548_v52, %s3198_s1  ;;  %2659 = vst.msk [vmem:[%s5178_s3 + $0xc0] sm:$0xff] %vm2634_vm4, %v2626_v40 }
 0x328   :  { %v4680_v19 = vpop.permute.xlu2 %2998 }
 0x329   :  { %v2796_v22 = vpop.permute.xlu0 %2795 }
 0x32a   :  { %2876 = vst.msk [vmem:[%s5178_s3 + $0x80] sm:$0xff] %vm2859_vm8, %v2796_v22 }
 0x32d   :  { %v2948_v63 = vpop.trf.xlu1 }
 0x32e   :  { %3026 = vrot.lane.b32.xlu2 %v2943_v6, %s3199_s2 }
 0x32f   :  { %2811 = vrot.lane.b32.xlu0 %v4546_v10, %s3198_s1  ;;  %v2622_v10 = vld [vmem:[%s5177_s0 + $0xa0] sm:$0xff] }
 0x330   :  { %v3001_v2 = vpop.permute.xlu2 %3000  ;;  %2655 = vst.msk [vmem:[%s5178_s3 + $0xa0] sm:$0xff] %vm2634_vm4, %v2622_v10  ;;  %v2617_v10 = vld [vmem:[%s5177_s0 + $0x78] sm:$0xff] }
 0x331   :  { %v2766_v36 = vpop.permute.xlu0 %2765  ;;  %3091 = vst.msk [vmem:[%s5178_s3 + $0x30] sm:$0xff] %vm3084_vm15, %v3001_v2 }
 0x332   :  { %2861 = vst.msk [vmem:[%s5178_s3 + $0x8] sm:$0xff] %vm2859_vm8, %v2766_v36  ;;  %v2615_v36 = vld [vmem:[%s5177_s0 + $0x68] sm:$0xff] }
 0x333   :  { %3086 = vst.msk [vmem:[%s5178_s3 + $0x8] sm:$0xff] %vm3084_vm15, %v2991_v11  ;;  %v2627_v11 = vld [vmem:[%s5177_s0 + $0xc8] sm:$0xff] }
 0x334   :  { %2660 = vst.msk [vmem:[%s5178_s3 + $0xc8] sm:$0xff] %vm2634_vm4, %v2627_v11 }
 0x335   :  { %v2949_v50 = vpop.trf.xlu1  ;;  %2648 = vst.msk [vmem:[%s5178_s3 + $0x68] sm:$0xff] %vm2634_vm4, %v2615_v36 }
 0x336   :  { %3028 = vrot.lane.b32.xlu2 %v2944_v30, %s3199_s2  ;;  %2650 = vst.msk [vmem:[%s5178_s3 + $0x78] sm:$0xff] %vm2634_vm4, %v2617_v10 }
 0x337   :  { %2813 = vrot.lane.b32.xlu0 %v4552_v0, %s3198_s1 }
 0x338   :  { %v4718_v61 = vpop.permute.xlu2 %3004 }
 0x339   :  { %v2798_v31 = vpop.permute.xlu0 %2797 }
 0x33a   :  { %2877 = vst.msk [vmem:[%s5178_s3 + $0x88] sm:$0xff] %vm2859_vm8, %v2798_v31  ;;  %v2631_v31 = vld [vmem:[%s5177_s0 + $0xe8] sm:$0xff] }
 0x33b   :  { %2664 = vst.msk [vmem:[%s5178_s3 + $0xe8] sm:$0xff] %vm2634_vm4, %v2631_v31 }
 0x33d   :  { %v2950_v0 = vpop.trf.xlu1 }
 0x33e   :  { %3030 = vrot.lane.b32.xlu2 %v2945_v20, %s3199_s2  ;;  %v2629_v20 = vld [vmem:[%s5177_s0 + $0xd8] sm:$0xff] }
 0x33f   :  { %2783 = vrot.lane.b32.xlu0 %v4562_v39, %s3198_s1  ;;  %v2623_v39 = vld [vmem:[%s5177_s0 + $0xa8] sm:$0xff]  ;;  %2662 = vst.msk [vmem:[%s5178_s3 + $0xd8] sm:$0xff] %vm2634_vm4, %v2629_v20 }
 0x340   :  { %v4734_v27 = vpop.permute.xlu2 %3006  ;;  %2656 = vst.msk [vmem:[%s5178_s3 + $0xa8] sm:$0xff] %vm2634_vm4, %v2623_v39 }
 0x341   :  { %v2768_v1 = vpop.permute.xlu0 %2767 }
 0x342   :  { %2862 = vst.msk [vmem:[%s5178_s3 + $0x10] sm:$0xff] %vm2859_vm8, %v2768_v1 }
 0x343   :  { %3087 = vst.msk [vmem:[%s5178_s3 + $0x10] sm:$0xff] %vm3084_vm15, %v2993_v26  ;;  %v2612_v26 = vld [vmem:[%s5177_s0 + $0x50] sm:$0xff] }
 0x344   :  { %2645 = vst.msk [vmem:[%s5178_s3 + $0x50] sm:$0xff] %vm2634_vm4, %v2612_v26 }
 0x346   :  { %3032 = vrot.lane.b32.xlu2 %v2946_v18, %s3199_s2  ;;  %v2630_v18 = vld [vmem:[%s5177_s0 + $0xe0] sm:$0xff] }
 0x347   :  { %2815 = vrot.lane.b32.xlu0 %v4558_v12, %s3198_s1  ;;  %2663 = vst.msk [vmem:[%s5178_s3 + $0xe0] sm:$0xff] %vm2634_vm4, %v2630_v18 }
 0x348   :  { %v4754_v37 = vpop.permute.xlu2 %3008 }
 0x349   :  { %v2800_v4 = vpop.permute.xlu0 %2799 }
 0x34a   :  { %2878 = vst.msk [vmem:[%s5178_s3 + $0x90] sm:$0xff] %vm2859_vm8, %v2800_v4 }
 0x34e   :  { %3034 = vrot.lane.b32.xlu2 %v2947_v5, %s3199_s2 }
 0x34f   :  { %2785 = vrot.lane.b32.xlu0 %v4566_v54, %s3198_s1  ;;  %v2951_v54 = vpop.trf.xlu1 }
 0x350   :  { %v4770_v42 = vpop.permute.xlu2 %3012 }
 0x351   :  { %v2770_v52 = vpop.permute.xlu0 %2769 }
 0x352   :  { %2863 = vst.msk [vmem:[%s5178_s3 + $0x18] sm:$0xff] %vm2859_vm8, %v2770_v52 }
 0x353   :  { %3088 = vst.msk [vmem:[%s5178_s3 + $0x18] sm:$0xff] %vm3084_vm15, %v4645_v49  ;;  %v2613_v49 = vld [vmem:[%s5177_s0 + $0x58] sm:$0xff] }
 0x354   :  { %2646 = vst.msk [vmem:[%s5178_s3 + $0x58] sm:$0xff] %vm2634_vm4, %v2613_v49 }
 0x356   :  { %3036 = vrot.lane.b32.xlu2 %v2948_v63, %s3199_s2 }
 0x357   :  { %2817 = vrot.lane.b32.xlu0 %v4569_v55, %s3198_s1 }
 0x358   :  { %v4791_v46 = vpop.permute.xlu2 %3014 }
 0x359   :  { %v2802_v12 = vpop.permute.xlu0 %2801 }
 0x35a   :  { %2879 = vst.msk [vmem:[%s5178_s3 + $0x98] sm:$0xff] %vm2859_vm8, %v2802_v12 }
 0x35e   :  { %3038 = vrot.lane.b32.xlu2 %v2949_v50, %s3199_s2  ;;  %v2632_v50 = vld [vmem:[%s5177_s0 + $0xf0] sm:$0xff] }
 0x35f   :  { %2787 = vrot.lane.b32.xlu0 %v4572_v14, %s3198_s1  ;;  %v2952_v14 = vpop.trf.xlu1  ;;  %2665 = vst.msk [vmem:[%s5178_s3 + $0xf0] sm:$0xff] %vm2634_vm4, %v2632_v50 }
 0x360   :  { %v4807_v55 = vpop.permute.xlu2 %3016 }
 0x361   :  { %v2772_v59 = vpop.permute.xlu0 %2771 }
 0x362   :  { %2864 = vst.msk [vmem:[%s5178_s3 + $0x20] sm:$0xff] %vm2859_vm8, %v2772_v59 }
 0x363   :  { %3089 = vst.msk [vmem:[%s5178_s3 + $0x20] sm:$0xff] %vm3084_vm15, %v4659_v21 }
 0x366   :  { %3040 = vrot.lane.b32.xlu2 %v2950_v0, %s3199_s2  ;;  %v2633_v0 = vld [vmem:[%s5177_s0 + $0xf8] sm:$0xff] }
 0x367   :  { %2819 = vrot.lane.b32.xlu0 %v4576_v29, %s3198_s1  ;;  %v2611_v29 = vld [vmem:[%s5177_s0 + $0x48] sm:$0xff]  ;;  %v2953_v41 = vpop.trf.xlu1  ;;  %2666 = vst.msk [vmem:[%s5178_s3 + $0xf8] sm:$0xff] %vm2634_vm4, %v2633_v0 }
 0x368   :  { %v3021_v58 = vpop.permute.xlu2 %3020  ;;  %2644 = vst.msk [vmem:[%s5178_s3 + $0x48] sm:$0xff] %vm2634_vm4, %v2611_v29 }
 0x369   :  { %v2804_v45 = vpop.permute.xlu0 %2803  ;;  %3101 = vst.msk [vmem:[%s5178_s3 + $0x80] sm:$0xff] %vm3084_vm15, %v3021_v58 }
 0x36a   :  { %2880 = vst.msk [vmem:[%s5178_s3 + $0xa0] sm:$0xff] %vm2859_vm8, %v2804_v45 }
 0x36e   :  { %3042 = vrot.lane.b32.xlu2 %v2951_v54, %s3199_s2 }
 0x36f   :  { %2789 = vrot.lane.b32.xlu0 %v4578_v13, %s3198_s1  ;;  %v2954_v35 = vpop.trf.xlu1 }
 0x370   :  { %v4879_v47 = vpop.permute.xlu2 %3018 }
 0x371   :  { %v2774_v60 = vpop.permute.xlu0 %2773 }
 0x372   :  { %2865 = vst.msk [vmem:[%s5178_s3 + $0x28] sm:$0xff] %vm2859_vm8, %v2774_v60 }
 0x373   :  { %3090 = vst.msk [vmem:[%s5178_s3 + $0x28] sm:$0xff] %vm3084_vm15, %v4680_v19 }
 0x376   :  { %3044 = vrot.lane.b32.xlu2 %v2952_v14, %s3199_s2 }
 0x377   :  { %2821 = vrot.lane.b32.xlu0 %v4582_v43, %s3198_s1  ;;  %v2955_v32 = vpop.trf.xlu1 }
 0x378   :  { %v3023_v56 = vpop.permute.xlu2 %3022 }
 0x379   :  { %v2806_v13 = vpop.permute.xlu0 %2805  ;;  %3102 = vst.msk [vmem:[%s5178_s3 + $0x88] sm:$0xff] %vm3084_vm15, %v3023_v56 }
 0x37a   :  { %2881 = vst.msk [vmem:[%s5178_s3 + $0xa8] sm:$0xff] %vm2859_vm8, %v2806_v13 }
 0x37e   :  { %3046 = vrot.lane.b32.xlu2 %v2953_v41, %s3199_s2 }
 0x37f   :  { %2791 = vrot.lane.b32.xlu0 %v4584_v16, %s3198_s1 }
 0x380   :  { %v3025_v48 = vpop.permute.xlu2 %3024 }
 0x381   :  { %v2808_v43 = vpop.permute.xlu0 %2807  ;;  %3103 = vst.msk [vmem:[%s5178_s3 + $0x90] sm:$0xff] %vm3084_vm15, %v3025_v48 }
 0x382   :  { %2882 = vst.msk [vmem:[%s5178_s3 + $0xb0] sm:$0xff] %vm2859_vm8, %v2808_v43 }
 0x386   :  { %3048 = vrot.lane.b32.xlu2 %v2954_v35, %s3199_s2 }
 0x387   :  { %2823 = vrot.lane.b32.xlu0 %v4595_v51, %s3198_s1 }
 0x388   :  { %v3027_v53 = vpop.permute.xlu2 %3026 }
 0x389   :  { %v2778_v16 = vpop.permute.xlu0 %2777  ;;  %3104 = vst.msk [vmem:[%s5178_s3 + $0x98] sm:$0xff] %vm3084_vm15, %v3027_v53 }
 0x38a   :  { %2867 = vst.msk [vmem:[%s5178_s3 + $0x38] sm:$0xff] %vm2859_vm8, %v2778_v16 }
 0x38d   :  { %v2782_v51 = vpop.permute.xlu1 %2781 }
 0x38e   :  { %2869 = vst.msk [vmem:[%s5178_s3 + $0x48] sm:$0xff] %vm2859_vm8, %v2782_v51  ;;  %3050 = vrot.lane.b32.xlu2 %v2955_v32, %s3199_s2 }
 0x38f   :  { %3094 = vst.msk [vmem:[%s5178_s3 + $0x48] sm:$0xff] %vm3084_vm15, %v4734_v27  ;;  %2793 = vrot.lane.b32.xlu0 %v4597_v44, %s3198_s1  ;;  %v2616_v27 = vld [vmem:[%s5177_s0 + $0x70] sm:$0xff] }
 0x390   :  { %v3029_v30 = vpop.permute.xlu2 %3028  ;;  %2649 = vst.msk [vmem:[%s5178_s3 + $0x70] sm:$0xff] %vm2634_vm4, %v2616_v27 }
 0x391   :  { %v2810_v6 = vpop.permute.xlu0 %2809  ;;  %3105 = vst.msk [vmem:[%s5178_s3 + $0xa0] sm:$0xff] %vm3084_vm15, %v3029_v30 }
 0x392   :  { %2883 = vst.msk [vmem:[%s5178_s3 + $0xb8] sm:$0xff] %vm2859_vm8, %v2810_v6 }
 0x395   :  { %v3011_v23 = vpop.permute.xlu1 %3010 }
 0x397   :  { %2825 = vrot.lane.b32.xlu0 %v4602_v15, %s3198_s1 }
 0x398   :  { %v3031_v28 = vpop.permute.xlu2 %3030 }
 0x399   :  { %v2780_v44 = vpop.permute.xlu0 %2779  ;;  %3106 = vst.msk [vmem:[%s5178_s3 + $0xa8] sm:$0xff] %vm3084_vm15, %v3031_v28 }
 0x39a   :  { %2868 = vst.msk [vmem:[%s5178_s3 + $0x40] sm:$0xff] %vm2859_vm8, %v2780_v44 }
 0x39b   :  { %3093 = vst.msk [vmem:[%s5178_s3 + $0x40] sm:$0xff] %vm3084_vm15, %v4718_v61 }
 0x39f   :  { %3002 = vrot.lane.b32.xlu0 %v4560_v3, %s3199_s2 }
 0x3a0   :  { %v3033_v21 = vpop.permute.xlu2 %3032 }
 0x3a1   :  { %v2812_v15 = vpop.permute.xlu0 %2811  ;;  %3107 = vst.msk [vmem:[%s5178_s3 + $0xb0] sm:$0xff] %vm3084_vm15, %v3033_v21 }
 0x3a2   :  { %2884 = vst.msk [vmem:[%s5178_s3 + $0xc0] sm:$0xff] %vm2859_vm8, %v2812_v15 }
 0x3a8   :  { %v3035_v19 = vpop.permute.xlu2 %3034 }
 0x3a9   :  { %v2814_v3 = vpop.permute.xlu0 %2813  ;;  %3108 = vst.msk [vmem:[%s5178_s3 + $0xb8] sm:$0xff] %vm3084_vm15, %v3035_v19 }
 0x3aa   :  { %2885 = vst.msk [vmem:[%s5178_s3 + $0xc8] sm:$0xff] %vm2859_vm8, %v2814_v3 }
 0x3b0   :  { %v3037_v25 = vpop.permute.xlu2 %3036 }
 0x3b1   :  { %v2784_v17 = vpop.permute.xlu0 %2783  ;;  %3109 = vst.msk [vmem:[%s5178_s3 + $0xc0] sm:$0xff] %vm3084_vm15, %v3037_v25 }
 0x3b2   :  { %2870 = vst.msk [vmem:[%s5178_s3 + $0x50] sm:$0xff] %vm2859_vm8, %v2784_v17 }
 0x3b3   :  { %3095 = vst.msk [vmem:[%s5178_s3 + $0x50] sm:$0xff] %vm3084_vm15, %v4754_v37 }
 0x3b8   :  { %v3039_v5 = vpop.permute.xlu2 %3038 }
 0x3b9   :  { %v2816_v22 = vpop.permute.xlu0 %2815  ;;  %3110 = vst.msk [vmem:[%s5178_s3 + $0xc8] sm:$0xff] %vm3084_vm15, %v3039_v5 }
 0x3ba   :  { %2886 = vst.msk [vmem:[%s5178_s3 + $0xd0] sm:$0xff] %vm2859_vm8, %v2816_v22 }
 0x3c0   :  { %v3041_v62 = vpop.permute.xlu2 %3040 }
 0x3c1   :  { %v2786_v2 = vpop.permute.xlu0 %2785  ;;  %3111 = vst.msk [vmem:[%s5178_s3 + $0xd0] sm:$0xff] %vm3084_vm15, %v3041_v62 }
 0x3c2   :  { %2871 = vst.msk [vmem:[%s5178_s3 + $0x58] sm:$0xff] %vm2859_vm8, %v2786_v2 }
 0x3c3   :  { %3096 = vst.msk [vmem:[%s5178_s3 + $0x58] sm:$0xff] %vm3084_vm15, %v3011_v23 }
 0x3c8   :  { %v3043_v1 = vpop.permute.xlu2 %3042 }
 0x3c9   :  { %v2818_v61 = vpop.permute.xlu0 %2817 }
 0x3ca   :  { %2887 = vst.msk [vmem:[%s5178_s3 + $0xd8] sm:$0xff] %vm2859_vm8, %v2818_v61 }
 0x3cb   :  { %3112 = vst.msk [vmem:[%s5178_s3 + $0xd8] sm:$0xff] %vm3084_vm15, %v3043_v1 }
 0x3d0   :  { %v3045_v37 = vpop.permute.xlu2 %3044 }
 0x3d1   :  { %v2788_v63 = vpop.permute.xlu0 %2787 }
 0x3d2   :  { %2872 = vst.msk [vmem:[%s5178_s3 + $0x60] sm:$0xff] %vm2859_vm8, %v2788_v63 }
 0x3d3   :  { %3097 = vst.msk [vmem:[%s5178_s3 + $0x60] sm:$0xff] %vm3084_vm15, %v4770_v42 }
 0x3d8   :  { %v3047_v42 = vpop.permute.xlu2 %3046 }
 0x3d9   :  { %v2820_v9 = vpop.permute.xlu0 %2819 }
 0x3da   :  { %2888 = vst.msk [vmem:[%s5178_s3 + $0xe0] sm:$0xff] %vm2859_vm8, %v2820_v9 }
 0x3db   :  { %3113 = vst.msk [vmem:[%s5178_s3 + $0xe0] sm:$0xff] %vm3084_vm15, %v3045_v37 }
 0x3e1   :  { %v2790_v4 = vpop.permute.xlu0 %2789 }
 0x3e2   :  { %2873 = vst.msk [vmem:[%s5178_s3 + $0x68] sm:$0xff] %vm2859_vm8, %v2790_v4 }
 0x3e3   :  { %3098 = vst.msk [vmem:[%s5178_s3 + $0x68] sm:$0xff] %vm3084_vm15, %v4791_v46  ;;  %v3049_v46 = vpop.permute.xlu2 %3048 }
 0x3e9   :  { %v2822_v52 = vpop.permute.xlu0 %2821 }
 0x3ea   :  { %2889 = vst.msk [vmem:[%s5178_s3 + $0xe8] sm:$0xff] %vm2859_vm8, %v2822_v52 }
 0x3eb   :  { %3114 = vst.msk [vmem:[%s5178_s3 + $0xe8] sm:$0xff] %vm3084_vm15, %v3047_v42  ;;  %v3051_v54 = vpop.permute.xlu2 %3050 }
 0x3f1   :  { %v2792_v34 = vpop.permute.xlu0 %2791 }
 0x3f2   :  { %2874 = vst.msk [vmem:[%s5178_s3 + $0x70] sm:$0xff] %vm2859_vm8, %v2792_v34 }
 0x3f3   :  { %3099 = vst.msk [vmem:[%s5178_s3 + $0x70] sm:$0xff] %vm3084_vm15, %v4807_v55 }
 0x3f9   :  { %v2824_v12 = vpop.permute.xlu0 %2823 }
 0x3fa   :  { %2890 = vst.msk [vmem:[%s5178_s3 + $0xf0] sm:$0xff] %vm2859_vm8, %v2824_v12 }
 0x3fb   :  { %3115 = vst.msk [vmem:[%s5178_s3 + $0xf0] sm:$0xff] %vm3084_vm15, %v3049_v46 }
 0x401   :  { %v2794_v39 = vpop.permute.xlu0 %2793 }
 0x402   :  { %2875 = vst.msk [vmem:[%s5178_s3 + $0x78] sm:$0xff] %vm2859_vm8, %v2794_v39 }
 0x403   :  { %3100 = vst.msk [vmem:[%s5178_s3 + $0x78] sm:$0xff] %vm3084_vm15, %v4879_v47 }
 0x409   :  { %v2826_v55 = vpop.permute.xlu0 %2825 }
 0x40a   :  { %2891 = vst.msk [vmem:[%s5178_s3 + $0xf8] sm:$0xff] %vm2859_vm8, %v2826_v55 }
 0x40b   :  { %3116 = vst.msk [vmem:[%s5178_s3 + $0xf8] sm:$0xff] %vm3084_vm15, %v3051_v54 }
 0x411   :  { %v3003_v59 = vpop.permute.xlu0 %3002 }
 0x412   :  { %3092 = vst.msk [vmem:[%s5178_s3 + $0x38] sm:$0xff] %vm3084_vm15, %v3003_v59 }

</bundles_post_ra>
